<compile_context>
chip_gen: v7x
topology: tpu7x:2x2x1
jax: 0.10.0
libtpu: 0.0.40
codegen_flags: <defaults>
</compile_context>

<pallas_src>
import jax
import jax.numpy as jnp
from jax.experimental import pallas as pl
from jax.experimental.pallas import tpu as pltpu


def _gcn_fused_kernel(adj_ref, x_ref, w1_ref, b1_ref, w2_ref, b2_ref, o_ref):
    """Whole GCN forward in one step (all operands VMEM-resident).

    adj_ref : (N, N)   f32  (cast to bf16 in-kernel)
    x_ref   : (N, F)   f32  (cast to bf16 in-kernel)
    w1_ref  : (F, H1)  bf16
    b1_ref  : (1, H1)  f32
    w2_ref  : (H1, H2) bf16
    b2_ref  : (1, H2)  f32
    o_ref   : (N, H2)  f32
    """
    adj = adj_ref[...].astype(jnp.bfloat16)
    x = x_ref[...].astype(jnp.bfloat16)

    # gc1, re-associated: t = adj @ x   (N,N,F MACs instead of N,N,H1)
    t = jnp.dot(adj, x, preferred_element_type=jnp.float32).astype(jnp.bfloat16)

    # h = relu(t @ W1 + b1)
    h = jnp.dot(t, w1_ref[...], preferred_element_type=jnp.float32)
    h = jnp.maximum(h + b1_ref[...], 0.0)
    # TODO(synk): training-mode dropout (pltpu.prng_seed + prng_random_bits) would
    # be applied to h here; eval-mode F.dropout is the identity, which we reproduce.

    # gc2: s = h @ W2  (f32 accumulate, single bf16 cast), emb = adj @ s + b2
    s = jnp.dot(h.astype(jnp.bfloat16), w2_ref[...], preferred_element_type=jnp.float32)
    o_ref[...] = (
        jnp.dot(adj, s.astype(jnp.bfloat16), preferred_element_type=jnp.float32)
        + b2_ref[...]
    )


def prepare_params(params):
    """One-time conversion of parameters to kernel layout/dtypes.

    Do this once at init — NOT per forward call — so no cast ops appear in the
    per-call graph (perf-review item: move dtype casts out of the wrapper).
    """
    return {
        "w1": params["w1"].astype(jnp.bfloat16),
        "b1": params["b1"].reshape(1, -1).astype(jnp.float32),
        "w2": params["w2"].astype(jnp.bfloat16),
        "b2": params["b2"].reshape(1, -1).astype(jnp.float32),
    }


def gcn_vanilla_forward(x, adj, params, dropout_rate=0.5, training=False):
    """emb = adj @ relu(adj @ x @ W1 + b1) @ W2 + b2, in one Pallas kernel call."""
    if training and dropout_rate > 0.0:
        # TODO(synk): in-kernel dropout mask via the TPU hardware PRNG.
        raise NotImplementedError("training-mode dropout not implemented")

    N, F = x.shape
    assert adj.shape == (N, N), (adj.shape, x.shape)

    w1, b1, w2, b2 = params["w1"], params["b1"], params["w2"], params["b2"]
    # Accept either prepared (bf16 / 2-D bias) or raw params; only cast if needed.
    if w1.dtype != jnp.bfloat16:
        w1 = w1.astype(jnp.bfloat16)
    if w2.dtype != jnp.bfloat16:
        w2 = w2.astype(jnp.bfloat16)
    H1, H2 = w1.shape[1], w2.shape[1]
    assert w1.shape[0] == F and w2.shape[0] == H1
    b1 = b1.reshape(1, H1).astype(jnp.float32)
    b2 = b2.reshape(1, H2).astype(jnp.float32)

    # ---- generation-aware VMEM budget -------------------------------------
    try:
        vmem_cap = int(pltpu.get_tpu_info().vmem_capacity_bytes)
    except Exception:
        vmem_cap = 64 * 1024 * 1024  # conservative (v7x per-TC physical)

    in_out_bytes = (
        4 * N * N          # adj f32
        + 4 * N * F        # x   f32
        + 2 * F * H1       # W1  bf16
        + 4 * H1           # b1  f32
        + 2 * H1 * H2      # W2  bf16
        + 4 * H2           # b2  f32
        + 4 * N * H2       # out f32
    )
    # temporaries: bf16 adj/x/t, f32+bf16 h, f32+bf16 s
    interm_bytes = 2 * N * N + 4 * N * F + 6 * N * H1 + 6 * N * H2
    # Pallas double-buffers pipelined blocks even when their index is constant.
    need = 2 * in_out_bytes + interm_bytes
    budget = int(0.9 * vmem_cap)
    if need > budget:
        # TODO(synk): row-tiled ("parallel" over N for v7x's 2 TCs) + hidden-streamed
        # ("arbitrary") fallback with f32 s-accumulation and a single adj@s finalize
        # for graphs whose dense working set exceeds VMEM.
        raise NotImplementedError("graph too large for the fully-resident fused kernel")
    vmem_limit = min(budget, max(2 * need, 32 * 1024 * 1024))

    flops = 2 * (N * N * F + N * F * H1 + N * H1 * H2 + N * N * H2)

    return pl.pallas_call(
        _gcn_fused_kernel,
        out_shape=jax.ShapeDtypeStruct((N, H2), jnp.float32),
        grid_spec=pltpu.PrefetchScalarGridSpec(
            num_scalar_prefetch=0,
            grid=(1,),  # single step: everything resident, one HBM writeback
            in_specs=[
                pl.BlockSpec((N, N), lambda i: (0, 0)),    # adj (f32, cast in-kernel)
                pl.BlockSpec((N, F), lambda i: (0, 0)),    # x   (f32, cast in-kernel)
                pl.BlockSpec((F, H1), lambda i: (0, 0)),   # W1  bf16, fully resident
                pl.BlockSpec((1, H1), lambda i: (0, 0)),   # b1
                pl.BlockSpec((H1, H2), lambda i: (0, 0)),  # W2  bf16, fully resident
                pl.BlockSpec((1, H2), lambda i: (0, 0)),   # b2
            ],
            out_specs=pl.BlockSpec((N, H2), lambda i: (0, 0)),
        ),
        compiler_params=pltpu.CompilerParams(
            dimension_semantics=("arbitrary",),
            vmem_limit_bytes=vmem_limit,
        ),
        cost_estimate=pl.CostEstimate(
            flops=flops, transcendentals=0, bytes_accessed=in_out_bytes
        ),
    )(x.astype(jnp.float32), adj.astype(jnp.float32), w1, b1, w2, b2)[::1] if False else pl.pallas_call(
        _gcn_fused_kernel,
        out_shape=jax.ShapeDtypeStruct((N, H2), jnp.float32),
        grid_spec=pltpu.PrefetchScalarGridSpec(
            num_scalar_prefetch=0,
            grid=(1,),
            in_specs=[
                pl.BlockSpec((N, N), lambda i: (0, 0)),
                pl.BlockSpec((N, F), lambda i: (0, 0)),
                pl.BlockSpec((F, H1), lambda i: (0, 0)),
                pl.BlockSpec((1, H1), lambda i: (0, 0)),
                pl.BlockSpec((H1, H2), lambda i: (0, 0)),
                pl.BlockSpec((1, H2), lambda i: (0, 0)),
            ],
            out_specs=pl.BlockSpec((N, H2), lambda i: (0, 0)),
        ),
        compiler_params=pltpu.CompilerParams(
            dimension_semantics=("arbitrary",),
            vmem_limit_bytes=vmem_limit,
        ),
        cost_estimate=pl.CostEstimate(
            flops=flops, transcendentals=0, bytes_accessed=in_out_bytes
        ),
    )(adj, x, w1, b1, w2, b2)


def init_params(key, nfeat, nhid):
    """Matches GraphConvolution.reset_parameters: U(-1/sqrt(out), 1/sqrt(out))."""
    hid1 = 20 * nhid
    k1, k2, k3, k4 = jax.random.split(key, 4)
    s1 = 1.0 / jnp.sqrt(hid1)
    s2 = 1.0 / jnp.sqrt(nhid)
    return {
        "w1": jax.random.uniform(k1, (nfeat, hid1), jnp.float32, -s1, s1),
        "b1": jax.random.uniform(k2, (hid1,), jnp.float32, -s1, s1),
        "w2": jax.random.uniform(k3, (hid1, nhid), jnp.float32, -s2, s2),
        "b2": jax.random.uniform(k4, (nhid,), jnp.float32, -s2, s2),
    }


def _reference_f32(x, adj, p):
    """Pure-f32 PyTorch-equivalent forward (eval mode)."""
    h = jnp.maximum(adj @ (x @ p["w1"]) + p["b1"], 0.0)
    return adj @ (h @ p["w2"]) + p["b2"]


def _reference_bf16_mirror(x, adj, p):
    """Mirrors the kernel's bf16-operand / f32-accumulate arithmetic exactly."""
    f32 = jnp.float32
    adj_bf = adj.astype(jnp.bfloat16)
    x_bf = x.astype(jnp.bfloat16)
    t = jnp.dot(adj_bf, x_bf, preferred_element_type=f32).astype(jnp.bfloat16)
    h = jnp.dot(t, p["w1"].astype(jnp.bfloat16), preferred_element_type=f32)
    h = jnp.maximum(h + p["b1"].reshape(1, -1), 0.0)
    s = jnp.dot(h.astype(jnp.bfloat16), p["w2"].astype(jnp.bfloat16),
                preferred_element_type=f32)
    return jnp.dot(adj_bf, s.astype(jnp.bfloat16), preferred_element_type=f32) + \
        p["b2"].reshape(1, -1)


if __name__ == "__main__":
    N, NFEAT, NHID = 128, 128, 32  # hidden width 20*NHID = 640

    key = jax.random.PRNGKey(0)
    kx, ka, kp = jax.random.split(key, 3)

    x = jax.random.normal(kx, (N, NFEAT), jnp.float32)

    # symmetric, self-looped, row-normalized adjacency (typical GCN preprocessing)
    a = (jax.random.uniform(ka, (N, N)) < 0.05).astype(jnp.float32)
    a = jnp.maximum(a, a.T) + jnp.eye(N, dtype=jnp.float32)
    adj = a / jnp.sum(a, axis=1, keepdims=True)

    params = init_params(kp, NFEAT, NHID)
    prepared = prepare_params(params)  # one-time bf16 weight conversion

    emb = gcn_vanilla_forward(x, adj, prepared)
    emb = jax.block_until_ready(emb)
    assert emb.shape == (N, NHID)

    # Exact-math check against a JAX mirror of the kernel's bf16/f32 arithmetic.
    ref_mirror = _reference_bf16_mirror(x, adj, params)
    assert jnp.allclose(emb, ref_mirror, atol=2e-3, rtol=2e-3), "mismatch vs bf16 mirror"

    # Semantic check against the pure-f32 PyTorch-equivalent forward
    # (tolerance loosened for bf16 MXU operands).
    ref_f32 = _reference_f32(x, adj, params)
    assert jnp.allclose(emb, ref_f32, atol=3e-2, rtol=3e-2), "mismatch vs f32 reference"

    print("KERNEL_OK")
</pallas_src>

<mosaic_0001>
module attributes {stable_mosaic.version = 11 : i64} {
  func.func @_gcn_fused_kernel(%arg0: i32, %arg1: memref<128x128xf32, #tpu.memory_space<vmem>>, %arg2: memref<128x128xf32, #tpu.memory_space<vmem>>, %arg3: memref<128x640xbf16, #tpu.memory_space<vmem>>, %arg4: memref<1x640xf32, #tpu.memory_space<vmem>>, %arg5: memref<640x32xbf16, #tpu.memory_space<vmem>>, %arg6: memref<1x32xf32, #tpu.memory_space<vmem>>, %arg7: memref<128x32xf32, #tpu.memory_space<vmem>>) attributes {dimension_semantics = [#tpu.dimension_semantics<arbitrary>], iteration_bounds = array<i64: 1>, scalar_prefetch = 0 : i64, scratch_operands = 0 : i64, tpu.core_type = #tpu.core_type<tc>, window_params = [{pipeline_mode = #tpu.pipeline_mode<synchronous>, transform_indices = @transform_0, window_bounds = array<i64: 128, 128>}, {pipeline_mode = #tpu.pipeline_mode<synchronous>, transform_indices = @transform_1, window_bounds = array<i64: 128, 128>}, {pipeline_mode = #tpu.pipeline_mode<synchronous>, transform_indices = @transform_2, window_bounds = array<i64: 128, 640>}, {pipeline_mode = #tpu.pipeline_mode<synchronous>, transform_indices = @transform_3, window_bounds = array<i64: 1, 640>}, {pipeline_mode = #tpu.pipeline_mode<synchronous>, transform_indices = @transform_4, window_bounds = array<i64: 640, 32>}, {pipeline_mode = #tpu.pipeline_mode<synchronous>, transform_indices = @transform_5, window_bounds = array<i64: 1, 32>}, {pipeline_mode = #tpu.pipeline_mode<synchronous>, transform_indices = @transform_6, window_bounds = array<i64: 128, 32>}]} {
    %c0 = arith.constant 0 : index
    %c0_0 = arith.constant 0 : index
    %0 = vector.load %arg1[%c0, %c0_0] : memref<128x128xf32, #tpu.memory_space<vmem>>, vector<128x128xf32>
    %1 = arith.truncf %0 : vector<128x128xf32> to vector<128x128xbf16>
    %c0_1 = arith.constant 0 : index
    %c0_2 = arith.constant 0 : index
    %2 = vector.load %arg2[%c0_1, %c0_2] : memref<128x128xf32, #tpu.memory_space<vmem>>, vector<128x128xf32>
    %3 = arith.truncf %2 : vector<128x128xf32> to vector<128x128xbf16>
    %cst = arith.constant dense<0.000000e+00> : vector<128x128xf32>
    %4 = tpu.matmul %1, %3, %cst {dimension_numbers = #tpu.dot_dimension_numbers<[1], [0], [0], [1], [0, 0, 1, 1], [], []>} : vector<128x128xbf16>, vector<128x128xbf16>, vector<128x128xf32> -> vector<128x128xf32>
    %5 = arith.truncf %4 : vector<128x128xf32> to vector<128x128xbf16>
    %c0_3 = arith.constant 0 : index
    %c0_4 = arith.constant 0 : index
    %6 = vector.load %arg3[%c0_3, %c0_4] : memref<128x640xbf16, #tpu.memory_space<vmem>>, vector<128x640xbf16>
    %cst_5 = arith.constant dense<0.000000e+00> : vector<128x640xf32>
    %7 = tpu.matmul %5, %6, %cst_5 {dimension_numbers = #tpu.dot_dimension_numbers<[1], [0], [0], [1], [0, 0, 1, 1], [], []>} : vector<128x128xbf16>, vector<128x640xbf16>, vector<128x640xf32> -> vector<128x640xf32>
    %c0_6 = arith.constant 0 : index
    %c0_7 = arith.constant 0 : index
    %8 = vector.load %arg4[%c0_6, %c0_7] : memref<1x640xf32, #tpu.memory_space<vmem>>, vector<1x640xf32>
    %9 = vector.broadcast %8 : vector<1x640xf32> to vector<128x640xf32>
    %10 = arith.addf %7, %9 : vector<128x640xf32>
    %cst_8 = arith.constant 0.000000e+00 : f32
    %11 = vector.broadcast %cst_8 : f32 to vector<128x640xf32>
    %12 = arith.maximumf %10, %11 : vector<128x640xf32>
    %13 = arith.truncf %12 : vector<128x640xf32> to vector<128x640xbf16>
    %c0_9 = arith.constant 0 : index
    %c0_10 = arith.constant 0 : index
    %14 = vector.load %arg5[%c0_9, %c0_10] : memref<640x32xbf16, #tpu.memory_space<vmem>>, vector<640x32xbf16>
    %cst_11 = arith.constant dense<0.000000e+00> : vector<128x32xf32>
    %15 = tpu.matmul %13, %14, %cst_11 {dimension_numbers = #tpu.dot_dimension_numbers<[1], [0], [0], [1], [0, 0, 1, 1], [], []>} : vector<128x640xbf16>, vector<640x32xbf16>, vector<128x32xf32> -> vector<128x32xf32>
    %16 = arith.truncf %15 : vector<128x32xf32> to vector<128x32xbf16>
    %cst_12 = arith.constant dense<0.000000e+00> : vector<128x32xf32>
    %17 = tpu.matmul %1, %16, %cst_12 {dimension_numbers = #tpu.dot_dimension_numbers<[1], [0], [0], [1], [0, 0, 1, 1], [], []>} : vector<128x128xbf16>, vector<128x32xbf16>, vector<128x32xf32> -> vector<128x32xf32>
    %c0_13 = arith.constant 0 : index
    %c0_14 = arith.constant 0 : index
    %18 = vector.load %arg6[%c0_13, %c0_14] : memref<1x32xf32, #tpu.memory_space<vmem>>, vector<1x32xf32>
    %19 = vector.broadcast %18 : vector<1x32xf32> to vector<128x32xf32>
    %20 = arith.addf %17, %19 : vector<128x32xf32>
    %c0_15 = arith.constant 0 : index
    %c0_16 = arith.constant 0 : index
    %21 = vector.load %arg7[%c0_15, %c0_16] : memref<128x32xf32, #tpu.memory_space<vmem>>, vector<128x32xf32>
    tpu.vector_store %arg7[%c0_15, %c0_16], %20 {strides = array<i32>} : memref<128x32xf32, #tpu.memory_space<vmem>>, vector<128x32xf32>,
    return
  }
  func.func @transform_0(%arg0: i32) -> (i32, i32) {
    %c0_i32 = arith.constant 0 : i32
    %c0_i32_0 = arith.constant 0 : i32
    %c0_i32_1 = arith.constant 0 : i32
    return %c0_i32, %c0_i32_0 : i32, i32
  }
  func.func @transform_1(%arg0: i32) -> (i32, i32) {
    %c0_i32 = arith.constant 0 : i32
    %c0_i32_0 = arith.constant 0 : i32
    %c0_i32_1 = arith.constant 0 : i32
    return %c0_i32, %c0_i32_0 : i32, i32
  }
  func.func @transform_2(%arg0: i32) -> (i32, i32) {
    %c0_i32 = arith.constant 0 : i32
    %c0_i32_0 = arith.constant 0 : i32
    %c0_i32_1 = arith.constant 0 : i32
    return %c0_i32, %c0_i32_0 : i32, i32
  }
  func.func @transform_3(%arg0: i32) -> (i32, i32) {
    %c0_i32 = arith.constant 0 : i32
    %c0_i32_0 = arith.constant 0 : i32
    %c0_i32_1 = arith.constant 0 : i32
    return %c0_i32, %c0_i32_0 : i32, i32
  }
  func.func @transform_4(%arg0: i32) -> (i32, i32) {
    %c0_i32 = arith.constant 0 : i32
    %c0_i32_0 = arith.constant 0 : i32
    %c0_i32_1 = arith.constant 0 : i32
    return %c0_i32, %c0_i32_0 : i32, i32
  }
  func.func @transform_5(%arg0: i32) -> (i32, i32) {
    %c0_i32 = arith.constant 0 : i32
    %c0_i32_0 = arith.constant 0 : i32
    %c0_i32_1 = arith.constant 0 : i32
    return %c0_i32, %c0_i32_0 : i32, i32
  }
  func.func @transform_6(%arg0: i32) -> (i32, i32) {
    %c0_i32 = arith.constant 0 : i32
    %c0_i32_0 = arith.constant 0 : i32
    %c0_i32_1 = arith.constant 0 : i32
    return %c0_i32, %c0_i32_0 : i32, i32
  }
}

</mosaic_0001>

<bundles_post_ra>
// kernel: tpu_custom_call.1
= control target key start
LH: loop header
LB: loop body
LE: loop exit
PB: predicated region body
PF: predicated region fallthrough
CT: control target
= control target key end

     0   :  { %11 = vsyncpa [#allocation3], 0  ;;  %s2806_s0 = inlined_call_operand.hbm [shape: f32[128,128], index: 0, kind: input, shape index: {}]   ;;  %s2807_s1 = inlined_call_operand.hbm [shape: f32[128,128], index: 1, kind: input, shape index: {}]   ;;  %s2808_s2 = inlined_call_operand.vmem [shape: bf16[128,640], index: 2, kind: input, shape index: {}]   ;;  %s2809_s3 = inlined_call_operand.vmem [shape: f32[1,640], index: 3, kind: input, shape index: {}]   ;;  %s2810_s4 = inlined_call_operand.vmem [shape: bf16[640,32], index: 4, kind: input, shape index: {}]   ;;  %s2811_s5 = inlined_call_operand.vmem [shape: f32[1,32], index: 5, kind: input, shape index: {}]   ;;  %s2812_s6 = inlined_call_operand.vmem [shape: f32[128,32], index: 6, kind: output, shape index: {}]  }
   0x1   :  { %12 = vsyncpa [#allocation5], 0  ;;  %s2227_s21 = smov [#allocation2]   ;;  %s2179_s25 = scalar_lea.hbm %s2806_s0, 2048 }
   0x2   :  { %s18_s22 = sshll.u32 %s2227_s21, 4  ;;  %p2180_p0 = scmp.ne.s32.totalorder %s2806_s0, %s2179_s25  ;;  %s19_s22 = int_to_ptr.vmem [resolvable:$true] %s18_s22 }
   0x3   :  { %p2183_p1 = scmp.lt.u32.totalorder %s2179_s25, %s2806_s0 }
   0x5   :  { %p2185_p2 = pnand %p2183_p1, %p2180_p0 }
   0x7   :  { %2188 = shalt.err (!%p2185_p2)
}
   0x8   :  { %s2189_s30 = scalar_lea.vmem %s19_s22, 2048  ;;  %p2194_p4 = scmp.lt.s32.totalorder %s19_s22, %s19_s22 }
   0x9   :  { %p2190_p3 = scmp.ne.s32.totalorder %s19_s22, %s2189_s30  ;;  %p2195_p5 = scmp.lt.s32.totalorder %s2189_s30, %s2189_s30 }
   0xb   :  { %p2196_p6 = por %p2195_p5, %p2194_p4 }
   0xd   :  { %p2197_p7 = pnand %p2196_p6, %p2190_p3 }
   0xf   :  { %2200 = shalt.err (!%p2197_p7)
}
  0x10   :  { %s2228_s7 = smov 128   ;;  %s2229_s8 = smov 8  }
  0x11   :  { %24 = dma.hbm_to_vmem [thread:$0]  %s2806_s0, 2048, %s19_s22, [#allocation3], %s2228_s7, %s2228_s7, %s2229_s8  }
  0x12   :  { %s2230_s11 = smov [#allocation4]   ;;  %s2201_s15 = scalar_lea.hbm %s2807_s1, 2048 }
  0x13   :  { %s30_s12 = sshll.u32 %s2230_s11, 4  ;;  %p2202_p8 = scmp.ne.s32.totalorder %s2807_s1, %s2201_s15  ;;  %s31_s12 = int_to_ptr.vmem [resolvable:$true] %s30_s12 }
  0x14   :  { %p2205_p9 = scmp.lt.u32.totalorder %s2201_s15, %s2807_s1 }
  0x16   :  { %p2207_p10 = pnand %p2205_p9, %p2202_p8 }
  0x18   :  { %2210 = shalt.err (!%p2207_p10)
}
  0x19   :  { %s2211_s20 = scalar_lea.vmem %s31_s12, 2048  ;;  %p2216_p12 = scmp.lt.s32.totalorder %s31_s12, %s31_s12 }
  0x1a   :  { %p2212_p11 = scmp.ne.s32.totalorder %s31_s12, %s2211_s20  ;;  %p2217_p13 = scmp.lt.s32.totalorder %s2211_s20, %s2211_s20 }
  0x1c   :  { %p2218_p0 = por %p2217_p13, %p2216_p12 }
  0x1e   :  { %p2219_p1 = pnand %p2218_p0, %p2212_p11 }
  0x20   :  { %2222 = shalt.err (!%p2219_p1)
}
  0x21   :  { %36 = dma.hbm_to_vmem [thread:$0]  %s2807_s1, 2048, %s31_s12, [#allocation5], %s2228_s7, %s2228_s7, %s2229_s8  }
  0x22   :  { %2223 = dma.done.wait [#allocation3], 2048  }
  0x23   :  { %2224 = vsyncadd [#allocation3], 4294965248 }
  0x24   :  { %2225 = dma.done.wait [#allocation5], 2048  }
  0x25   :  { %2226 = vsyncadd [#allocation5], 4294965248  ;;  %v76_v0 = vld [vmem:[#allocation4] sm:$0xff]  ;;  %v77_v1 = vld [vmem:[#allocation4 + $0x8] sm:$0xff]  ;;  %vm1654_vm0 = vcmask 261120  }
  0x26   :  { %v78_v2 = vld [vmem:[#allocation4 + $0x10] sm:$0xff]  ;;  %v92_v3 = vpack.c.bf16 %v77_v1, %v76_v0  ;;  %v79_v4 = vld [vmem:[#allocation4 + $0x18] sm:$0xff]  ;;  %v80_v6 = vld [vmem:[#allocation4 + $0x20] sm:$0xff] }
  0x27   :  { %v93_v5 = vpack.c.bf16 %v79_v4, %v78_v2  ;;  %v81_v7 = vld [vmem:[#allocation4 + $0x28] sm:$0xff]  ;;  %v52_v9 = vld [vmem:[#allocation2] sm:$0xff]  ;;  %v82_v11 = vld [vmem:[#allocation4 + $0x30] sm:$0xff] }
  0x28   :  { %1950 = vmatprep.subr.bf16.mxu0 %v92_v3  ;;  %v94_v8 = vpack.c.bf16 %v81_v7, %v80_v6  ;;  %v53_v10 = vld [vmem:[#allocation2 + $0x8] sm:$0xff]  ;;  %v83_v12 = vld [vmem:[#allocation4 + $0x38] sm:$0xff]  ;;  %v84_v15 = vld [vmem:[#allocation4 + $0x40] sm:$0xff] }
  0x29   :  { %1951 = vmatpush3.bf16.msra.mxu0 %v92_v3  ;;  %v2291_v13 = vpack.c.bf16 %v53_v10, %v52_v9  ;;  %v95_v14 = vpack.c.bf16 %v83_v12, %v82_v11  ;;  %v85_v16 = vld [vmem:[#allocation4 + $0x48] sm:$0xff]  ;;  %v2083_v17 = vld [vmem:[%s2808_s2 + $0x4] ss:$20 sps:$4 sm:$0xff]   ;;  %v86_v18 = vld [vmem:[#allocation4 + $0x50] sm:$0xff] }
  0x2a   :  { %1952 = vmatprep.subr.bf16.mxu0 %v93_v5  ;;  %v87_v19 = vld [vmem:[#allocation4 + $0x58] sm:$0xff]  ;;  %v96_v20 = vpack.c.bf16 %v85_v16, %v84_v15  ;;  %488 = vmatprep.subr.bf16.mxu1 %v2083_v17  ;;  %v2088_v21 = vld [vmem:[%s2808_s2] ss:$20 sps:$4 sm:$0xff]   ;;  %v89_v27 = vld [vmem:[#allocation4 + $0x68] sm:$0xff]  ;;  %v2231_v17 = vmov 0  }
  0x2b   :  { %1966 = vmatprep.mubr.bf16.mxu0 %v2291_v13  ;;  %v2089_v22 = vld [vmem:[%s2808_s2 + $0x2c] ss:$20 sps:$4 sm:$0xff]   ;;  %489 = vmatpush1.bf16.msra.mxu1 %v2088_v21  ;;  %v2094_v23 = vld [vmem:[%s2808_s2 + $0x28] ss:$20 sps:$4 sm:$0xff]   ;;  %v97_v25 = vpack.c.bf16 %v87_v19, %v86_v18  ;;  %v2100_v28 = vld [vmem:[%s2808_s2 + $0x50] ss:$20 sps:$4 sm:$0xff]  }
  0x2c   :  { %490 = vmatprep.subr.bf16.mxu1 %v2089_v22  ;;  %v2095_v24 = vld [vmem:[%s2808_s2 + $0x54] ss:$20 sps:$4 sm:$0xff]   ;;  %v88_v26 = vld [vmem:[#allocation4 + $0x60] sm:$0xff]  ;;  %v2101_v29 = vld [vmem:[%s2808_s2 + $0x7c] ss:$20 sps:$4 sm:$0xff]   ;;  %520 = vmatprep.mubr.bf16.mxu1 %v2231_v17 }
  0x2d   :  { %1953 = vmatpush3.bf16.msra.mxu0 %v93_v5  ;;  %v98_v30 = vpack.c.bf16 %v89_v27, %v88_v26  ;;  %v90_v31 = vld [vmem:[#allocation4 + $0x70] sm:$0xff]  ;;  %v91_v32 = vld [vmem:[#allocation4 + $0x78] sm:$0xff]  ;;  %v56_v38 = vld [vmem:[#allocation2 + $0x20] sm:$0xff] }
  0x2e   :  { %1954 = vmatprep.subr.bf16.mxu0 %v94_v8  ;;  %v2106_v33 = vld [vmem:[%s2808_s2 + $0x78] ss:$20 sps:$4 sm:$0xff]   ;;  %v99_v35 = vpack.c.bf16 %v91_v32, %v90_v31  ;;  %v54_v36 = vld [vmem:[#allocation2 + $0x10] sm:$0xff]  ;;  %v2118_v43 = vld [vmem:[%s2808_s2 + $0xc8] ss:$20 sps:$4 sm:$0xff]  }
  0x2f   :  { %491 = vmatpush1.bf16.msra.mxu1 %v2094_v23  ;;  %v2107_v34 = vld [vmem:[%s2808_s2 + $0xa4] ss:$20 sps:$4 sm:$0xff]   ;;  %v57_v39 = vld [vmem:[#allocation2 + $0x28] sm:$0xff]  ;;  %v2112_v40 = vld [vmem:[%s2808_s2 + $0xa0] ss:$20 sps:$4 sm:$0xff]  }
  0x30   :  { %492 = vmatprep.subr.bf16.mxu1 %v2095_v24  ;;  %v55_v37 = vld [vmem:[#allocation2 + $0x18] sm:$0xff]  ;;  %v2087_v41 = vld [vmem:[%s2808_s2 + $0xc] ss:$20 sps:$4 sm:$0xff]   ;;  %v2093_v46 = vld [vmem:[%s2808_s2 + $0x34] ss:$20 sps:$4 sm:$0xff]   ;;  %v2344_v48 = vpack.c.bf16 %v57_v39, %v56_v38 }
  0x31   :  { %1955 = vmatpush3.bf16.msra.mxu0 %v94_v8  ;;  %v2113_v42 = vld [vmem:[%s2808_s2 + $0xcc] ss:$20 sps:$4 sm:$0xff]   ;;  %v2085_v44 = vld [vmem:[%s2808_s2 + $0x8] ss:$20 sps:$4 sm:$0xff]   ;;  %v2336_v45 = vpack.c.bf16 %v55_v37, %v54_v36  ;;  %v2124_v49 = vld [vmem:[%s2808_s2 + $0xf0] ss:$20 sps:$4 sm:$0xff]  }
  0x32   :  { %1956 = vmatprep.subr.bf16.mxu0 %v95_v14  ;;  %v2119_v47 = vld [vmem:[%s2808_s2 + $0xf4] ss:$20 sps:$4 sm:$0xff]   ;;  %v59_v51 = vld [vmem:[#allocation2 + $0x38] sm:$0xff]  ;;  %v2091_v52 = vld [vmem:[%s2808_s2 + $0x30] ss:$20 sps:$4 sm:$0xff]  }
  0x33   :  { %493 = vmatpush1.bf16.msra.mxu1 %v2100_v28  ;;  %v58_v50 = vld [vmem:[#allocation2 + $0x30] sm:$0xff]  ;;  %v60_v53 = vld [vmem:[#allocation2 + $0x40] sm:$0xff]  ;;  %v61_v54 = vld [vmem:[#allocation2 + $0x48] sm:$0xff] }
  0x34   :  { %494 = vmatprep.subr.bf16.mxu1 %v2101_v29  ;;  %v2099_v55 = vld [vmem:[%s2808_s2 + $0x5c] ss:$20 sps:$4 sm:$0xff]   ;;  %v2097_v56 = vld [vmem:[%s2808_s2 + $0x58] ss:$20 sps:$4 sm:$0xff]   ;;  %v2360_v57 = vpack.c.bf16 %v59_v51, %v58_v50  ;;  %v2365_v59 = vpack.c.bf16 %v61_v54, %v60_v53  ;;  %v2103_v62 = vld [vmem:[%s2808_s2 + $0x80] ss:$20 sps:$4 sm:$0xff]  }
  0x35   :  { %1957 = vmatpush3.bf16.msra.mxu0 %v95_v14  ;;  %v2105_v58 = vld [vmem:[%s2808_s2 + $0x84] ss:$20 sps:$4 sm:$0xff]   ;;  %v62_v60 = vld [vmem:[#allocation2 + $0x50] sm:$0xff]  ;;  %v65_v0 = vld [vmem:[#allocation2 + $0x68] sm:$0xff] }
  0x36   :  { %1958 = vmatprep.subr.bf16.mxu0 %v96_v20  ;;  %v63_v61 = vld [vmem:[#allocation2 + $0x58] sm:$0xff]  ;;  %v64_v63 = vld [vmem:[#allocation2 + $0x60] sm:$0xff]  ;;  %v2117_v4 = vld [vmem:[%s2808_s2 + $0xd4] ss:$20 sps:$4 sm:$0xff]  }
  0x37   :  { %495 = vmatpush1.bf16.msra.mxu1 %v2106_v33  ;;  %v2111_v1 = vld [vmem:[%s2808_s2 + $0xac] ss:$20 sps:$4 sm:$0xff]   ;;  %v2109_v2 = vld [vmem:[%s2808_s2 + $0xa8] ss:$20 sps:$4 sm:$0xff]   ;;  %v2378_v3 = vpack.c.bf16 %v63_v61, %v62_v60  ;;  %v2383_v5 = vpack.c.bf16 %v65_v0, %v64_v63  ;;  %v66_v6 = vld [vmem:[#allocation2 + $0x70] sm:$0xff] }
  0x38   :  { %496 = vmatprep.subr.bf16.mxu1 %v2107_v34  ;;  %v67_v7 = vld [vmem:[#allocation2 + $0x78] sm:$0xff]  ;;  %v2115_v8 = vld [vmem:[%s2808_s2 + $0xd0] ss:$20 sps:$4 sm:$0xff]   ;;  %v2127_v15 = vld [vmem:[%s2808_s2 + $0x120] ss:$20 sps:$4 sm:$0xff]  }
  0x39   :  { %1959 = vmatpush3.bf16.msra.mxu0 %v96_v20  ;;  %v2123_v9 = vld [vmem:[%s2808_s2 + $0xfc] ss:$20 sps:$4 sm:$0xff]   ;;  %v2121_v10 = vld [vmem:[%s2808_s2 + $0xf8] ss:$20 sps:$4 sm:$0xff]   ;;  %v2396_v11 = vpack.c.bf16 %v67_v7, %v66_v6  ;;  %v2139_v19 = vld [vmem:[%s2810_s4 + $0x40] sm:$0xff]  }
  0x3a   :  { %1960 = vmatprep.subr.bf16.mxu0 %v97_v25  ;;  %v2125_v12 = vld [vmem:[%s2808_s2 + $0x11c] ss:$20 sps:$4 sm:$0xff]   ;;  %v2129_v14 = vld [vmem:[%s2808_s2 + $0x124] ss:$20 sps:$4 sm:$0xff]   ;;  %v2143_v28 = vld [vmem:[%s2810_s4 + $0x48] sm:$0xff]  }
  0x3b   :  { %497 = vmatpush1.bf16.msra.mxu1 %v2112_v40  ;;  %v2130_v16 = vld [vmem:[%s2808_s2 + $0x118] ss:$20 sps:$4 sm:$0xff]   ;;  %v2131_v18 = vld [vmem:[%s2808_s2 + $0x10] ss:$20 sps:$4 sm:$0xff]   ;;  %v2133_v32 = vld [vmem:[%s2808_s2 + $0x60] ss:$20 sps:$4 sm:$0xff]  }
  0x3c   :  { %498 = vmatprep.subr.bf16.mxu1 %v2113_v42  ;;  %v2141_v26 = vld [vmem:[%s2810_s4] sm:$0xff]   ;;  %v2132_v27 = vld [vmem:[%s2808_s2 + $0x38] ss:$20 sps:$4 sm:$0xff]   ;;  %v2147_v33 = vld [vmem:[%s2810_s4 + $0x50] sm:$0xff]  }
  0x3d   :  { %1961 = vmatpush3.bf16.msra.mxu0 %v97_v25  ;;  %v2149_v38 = vld [vmem:[%s2810_s4 + $0x10] sm:$0xff]   ;;  %v2134_v39 = vld [vmem:[%s2808_s2 + $0x88] ss:$20 sps:$4 sm:$0xff]   ;;  %v2136_v53 = vld [vmem:[%s2808_s2 + $0xd8] ss:$20 sps:$4 sm:$0xff]  }
  0x3e   :  { %1962 = vmatprep.subr.bf16.mxu0 %v98_v30  ;;  %v2151_v40 = vld [vmem:[%s2810_s4 + $0x58] sm:$0xff]   ;;  %v2159_v54 = vld [vmem:[%s2810_s4 + $0x68] sm:$0xff]   ;;  %v2148_v7 = vld [vmem:[%s2810_s4 + $0xd0] sm:$0xff]  }
  0x3f   :  { %499 = vmatpush1.bf16.msra.mxu1 %v2118_v43  ;;  %v2153_v42 = vld [vmem:[%s2810_s4 + $0x18] sm:$0xff]   ;;  %v2146_v6 = vld [vmem:[%s2810_s4 + $0x88] sm:$0xff]  }
  0x40   :  { %500 = vmatprep.subr.bf16.mxu1 %v2119_v47  ;;  %v2138_v0 = vld [vmem:[%s2808_s2 + $0x128] ss:$20 sps:$4 sm:$0xff]  }
  0x41   :  { %1963 = vmatpush3.bf16.msra.mxu0 %v98_v30  ;;  %v2145_v30 = vld [vmem:[%s2810_s4 + $0x8] sm:$0xff]  }
  0x42   :  { %1964 = vmatprep.subr.bf16.mxu0 %v99_v35 }
  0x43   :  { %501 = vmatpush1.bf16.msra.mxu1 %v2124_v49 }
  0x44   :  { %502 = vmatprep.subr.bf16.mxu1 %v2125_v12  ;;  %v2156_v12 = vld [vmem:[%s2810_s4 + $0xe0] sm:$0xff]  }
  0x45   :  { %1965 = vmatpush3.bf16.msra.mxu0 %v99_v35 }
  0x46   :  { %601 = vmatprep.subr.bf16.mxu0 %v2087_v41 }
  0x47   :  { %503 = vmatpush1.bf16.msra.mxu1 %v2130_v16  ;;  %v2161_v16 = vld [vmem:[%s2810_s4 + $0x28] sm:$0xff]  }
  0x48   :  { %1967 = vmatmul.mubr.bf16.vlgmr.msra.gmra.mrb[0].mxu0 %v2336_v45  ;;  %1982 = vmatprep.subr.bf16.mxu1 %v2131_v18 }
  0x49   :  { %1970 = vmatprep.mubr.bf16.mxu0 %v2344_v48  ;;  %602 = vmatpush1.bf16.msra.mxu0 %v2085_v44  ;;  %v2135_v44 = vld [vmem:[%s2808_s2 + $0xb0] ss:$20 sps:$4 sm:$0xff]  }
  0x4a   :  { %603 = vmatprep.subr.bf16.mxu0 %v2093_v46  ;;  %v2155_v46 = vld [vmem:[%s2810_s4 + $0x60] sm:$0xff]  }
  0x4d   :  { %604 = vmatpush1.bf16.msra.mxu0 %v2091_v52  ;;  %v2157_v52 = vld [vmem:[%s2810_s4 + $0x20] sm:$0xff]  }
  0x4e   :  { %605 = vmatprep.subr.bf16.mxu0 %v2099_v55 }
  0x50   :  { %1971 = vmatmul.mubr.bf16.gmra.mrb[4].mxu0 %v2360_v57 }
  0x51   :  { %1974 = vmatprep.mubr.bf16.mxu0 %v2365_v59  ;;  %606 = vmatpush1.bf16.msra.mxu0 %v2097_v56 }
  0x52   :  { %607 = vmatprep.subr.bf16.mxu0 %v2105_v58  ;;  %v2137_v58 = vld [vmem:[%s2808_s2 + $0x100] ss:$20 sps:$4 sm:$0xff]  }
  0x55   :  { %608 = vmatpush1.bf16.msra.mxu0 %v2103_v62 }
  0x56   :  { %609 = vmatprep.subr.bf16.mxu0 %v2111_v1  ;;  %v2140_v1 = vld [vmem:[%s2810_s4 + $0xc0] sm:$0xff]  }
  0x58   :  { %1975 = vmatmul.mubr.bf16.gmra.mrb[8].mxu0 %v2378_v3 }
  0x59   :  { %1978 = vmatprep.mubr.bf16.mxu0 %v2383_v5  ;;  %610 = vmatpush1.bf16.msra.mxu0 %v2109_v2  ;;  %v2142_v2 = vld [vmem:[%s2810_s4 + $0x80] sm:$0xff]  }
  0x5a   :  { %611 = vmatprep.subr.bf16.mxu0 %v2117_v4  ;;  %v2144_v4 = vld [vmem:[%s2810_s4 + $0xc8] sm:$0xff]  }
  0x5d   :  { %612 = vmatpush1.bf16.msra.mxu0 %v2115_v8  ;;  %v2150_v8 = vld [vmem:[%s2810_s4 + $0x90] sm:$0xff]  }
  0x5e   :  { %613 = vmatprep.subr.bf16.mxu0 %v2123_v9  ;;  %v2152_v9 = vld [vmem:[%s2810_s4 + $0xd8] sm:$0xff]  }
  0x60   :  { %1979 = vmatmul.mubr.bf16.gmra.mrb[12].mxu0 %v2396_v11 }
  0x61   :  { %614 = vmatpush1.bf16.msra.mxu0 %v2121_v10  ;;  %633 = vmatprep.mubr.bf16.mxu0 %v2231_v17  ;;  %v2154_v10 = vld [vmem:[%s2810_s4 + $0x98] sm:$0xff]  }
  0x62   :  { %615 = vmatprep.subr.bf16.mxu0 %v2129_v14  ;;  %v2158_v14 = vld [vmem:[%s2810_s4 + $0xa0] sm:$0xff]  }
  0x65   :  { %616 = vmatpush1.bf16.msra.mxu0 %v2127_v15  ;;  %v2160_v15 = vld [vmem:[%s2810_s4 + $0xe8] sm:$0xff]  }
  0x66   :  { %1790 = vmatprep.subr.bf16.mxu0 %v2139_v19  ;;  %v2164_v19 = vld [vmem:[%s2810_s4 + $0xf0] sm:$0xff]  }
 0x11b   :  { %v1968_v20 = vpop.f32.mrb[0].mxu0 }
 0x11c   :  { %v134_v21 = vpop.f32.mrb[1].mxu0 }
 0x11d   :  { %v1969_v22 = vpop.f32.mrb[2].mxu0 }
 0x11e   :  { %v2419_v23 = vpack.c.bf16 %v1969_v22, %v1968_v20  ;;  %v137_v24 = vpop.f32.mrb[3].mxu0  ;;  %v2165_v20 = vld [vmem:[%s2810_s4 + $0x30] sm:$0xff]   ;;  %v2167_v22 = vld [vmem:[%s2810_s4 + $0x78] sm:$0xff]  }
 0x11f   :  { %v2421_v25 = vpack.c.bf16 %v137_v24, %v134_v21  ;;  %v2166_v21 = vld [vmem:[%s2810_s4 + $0xb0] sm:$0xff]   ;;  %v2169_v24 = vld [vmem:[%s2810_s4 + $0x38] sm:$0xff]  }
 0x121   :  { %521 = vmatmul.mubr.bf16.vlgmr.msra.gmra.mrb[0].mxu1 %v2421_v25  ;;  %634 = vmatmul.mubr.bf16.vlgmr.msra.gmra.mrb[16].mxu0 %v2421_v25 }
 0x122   :  { %530 = vmatprep.mubr.bf16.mxu1 %v2231_v17  ;;  %643 = vmatprep.mubr.bf16.mxu0 %v2231_v17 }
 0x123   :  { %v1972_v29 = vpop.f32.mrb[4].mxu0  ;;  %1983 = vmatpush3.bf16.msra.mxu1 %v2131_v18  ;;  %1791 = vmatpush3.bf16.msra.mxu0 %v2141_v26  ;;  %v2163_v18 = vld [vmem:[%s2810_s4 + $0x70] sm:$0xff]   ;;  %v2580_v26 = vld [vmem:[%s2810_s4 + $0x100] sm:$0xff]  }
 0x124   :  { %v150_v31 = vpop.f32.mrb[5].mxu0  ;;  %1984 = vmatprep.subr.bf16.mxu1 %v2132_v27  ;;  %1792 = vmatprep.subr.bf16.mxu0 %v2143_v28 }
 0x125   :  { %v1973_v34 = vpop.f32.mrb[6].mxu0 }
 0x126   :  { %v2445_v35 = vpack.c.bf16 %v1973_v34, %v1972_v29  ;;  %v153_v36 = vpop.f32.mrb[7].mxu0 }
 0x127   :  { %v2447_v37 = vpack.c.bf16 %v153_v36, %v150_v31  ;;  %1985 = vmatpush3.bf16.msra.mxu1 %v2132_v27  ;;  %1793 = vmatpush3.bf16.msra.mxu0 %v2145_v30  ;;  %v255_v27 = vlaneseq  ;;  %v253_v30 = vld [vmem:[%s2809_s3] sm:$0x1f] }
 0x128   :  { %1986 = vmatprep.subr.bf16.mxu1 %v2133_v32  ;;  %1794 = vmatprep.subr.bf16.mxu0 %v2147_v33 }
 0x129   :  { %531 = vmatmul.mubr.bf16.gmra.mrb[4].mxu1 %v2419_v23  ;;  %644 = vmatmul.mubr.bf16.gmra.mrb[20].mxu0 %v2419_v23  ;;  %v256_v28 = vshrl.u32 %v255_v27, 7 }
 0x12a   :  { %540 = vmatprep.mubr.bf16.mxu1 %v2231_v17  ;;  %653 = vmatprep.mubr.bf16.mxu0 %v2231_v17 }
 0x12b   :  { %v1976_v41 = vpop.f32.mrb[8].mxu0  ;;  %1987 = vmatpush3.bf16.msra.mxu1 %v2133_v32  ;;  %1795 = vmatpush3.bf16.msra.mxu0 %v2149_v38  ;;  %v273_v29 = vsub.s32 4, %v256_v28  ;;  %v257_v32 = vsub.s32 0, %v256_v28  ;;  %v265_v33 = vsub.s32 2, %v256_v28  ;;  %v261_v34 = vsub.s32 1, %v256_v28 }
 0x12c   :  { %v166_v43 = vpop.f32.mrb[9].mxu0  ;;  %1988 = vmatprep.subr.bf16.mxu1 %v2134_v39  ;;  %1796 = vmatprep.subr.bf16.mxu0 %v2151_v40 }
 0x12d   :  { %v1977_v47 = vpop.f32.mrb[10].mxu0  ;;  %v2586_v31 = vrot.slane %v253_v30, %v273_v29  ;;  %v2588_v36 = vrot.slane %v253_v30, %v257_v32  ;;  %v2592_v38 = vrot.slane %v253_v30, %v261_v34 }
 0x12e   :  { %v2471_v49 = vpack.c.bf16 %v1977_v47, %v1976_v41  ;;  %v169_v50 = vpop.f32.mrb[11].mxu0 }
 0x12f   :  { %v201_v51 = vpack.c.bf16 %v169_v50, %v166_v43  ;;  %1989 = vmatpush3.bf16.msra.mxu1 %v2134_v39  ;;  %1797 = vmatpush3.bf16.msra.mxu0 %v2153_v42 }
 0x130   :  { %1990 = vmatprep.subr.bf16.mxu1 %v2135_v44  ;;  %1798 = vmatprep.subr.bf16.mxu0 %v2155_v46 }
 0x131   :  { %541 = vmatmul.mubr.bf16.gmra.mrb[8].mxu1 %v2447_v37  ;;  %654 = vmatmul.mubr.bf16.gmra.mrb[24].mxu0 %v2447_v37 }
 0x132   :  { %550 = vmatprep.mubr.bf16.mxu1 %v2231_v17  ;;  %663 = vmatprep.mubr.bf16.mxu0 %v2231_v17 }
 0x133   :  { %v1980_v55 = vpop.f32.mrb[12].mxu0  ;;  %1991 = vmatpush3.bf16.msra.mxu1 %v2135_v44  ;;  %1799 = vmatpush3.bf16.msra.mxu0 %v2157_v52 }
 0x134   :  { %v182_v56 = vpop.f32.mrb[13].mxu0  ;;  %1992 = vmatprep.subr.bf16.mxu1 %v2136_v53  ;;  %1800 = vmatprep.subr.bf16.mxu0 %v2159_v54 }
 0x135   :  { %v1981_v60 = vpop.f32.mrb[14].mxu0 }
 0x136   :  { %v2489_v61 = vpack.c.bf16 %v1981_v60, %v1980_v55  ;;  %v185_v62 = vpop.f32.mrb[15].mxu0 }
 0x137   :  { %v203_v63 = vpack.c.bf16 %v185_v62, %v182_v56  ;;  %1993 = vmatpush3.bf16.msra.mxu1 %v2136_v53  ;;  %1801 = vmatpush3.bf16.msra.mxu0 %v2161_v16 }
 0x138   :  { %1994 = vmatprep.subr.bf16.mxu1 %v2137_v58  ;;  %1802 = vmatprep.subr.bf16.mxu0 %v2163_v18  ;;  %v2172_v18 = vld [vmem:[%s2810_s4 + $0x108] sm:$0xff]  }
 0x139   :  { %551 = vmatmul.mubr.bf16.gmra.mrb[12].mxu1 %v2445_v35  ;;  %664 = vmatmul.mubr.bf16.gmra.mrb[28].mxu0 %v2445_v35 }
 0x13a   :  { %560 = vmatprep.mubr.bf16.mxu1 %v2231_v17  ;;  %673 = vmatprep.mubr.bf16.mxu0 %v2231_v17 }
 0x13b   :  { %1995 = vmatpush3.bf16.msra.mxu1 %v2137_v58  ;;  %1803 = vmatpush3.bf16.msra.mxu0 %v2165_v20 }
 0x13c   :  { %1996 = vmatprep.subr.bf16.mxu1 %v2138_v0  ;;  %1804 = vmatprep.subr.bf16.mxu0 %v2167_v22 }
 0x13f   :  { %1997 = vmatpush3.bf16.msra.mxu1 %v2138_v0  ;;  %1805 = vmatpush3.bf16.msra.mxu0 %v2169_v24 }
 0x140   :  { %1854 = vmatprep.subr.bf16.mxu1 %v2140_v1  ;;  %2014 = vmatprep.subr.bf16.mxu0 %v2580_v26 }
 0x141   :  { %561 = vmatmul.mubr.bf16.gmra.mrb[16].mxu1 %v201_v51  ;;  %674 = vmatmul.mubr.bf16.gmra.mrb[32].mxu0 %v201_v51 }
 0x142   :  { %570 = vmatprep.mubr.bf16.mxu1 %v2231_v17  ;;  %683 = vmatprep.mubr.bf16.mxu0 %v2231_v17 }
 0x149   :  { %571 = vmatmul.mubr.bf16.gmra.mrb[20].mxu1 %v2471_v49  ;;  %684 = vmatmul.mubr.bf16.gmra.mrb[36].mxu0 %v2471_v49 }
 0x14a   :  { %580 = vmatprep.mubr.bf16.mxu1 %v2231_v17  ;;  %693 = vmatprep.mubr.bf16.mxu0 %v2231_v17 }
 0x151   :  { %581 = vmatmul.mubr.bf16.gmra.mrb[24].mxu1 %v203_v63  ;;  %694 = vmatmul.mubr.bf16.gmra.mrb[40].mxu0 %v203_v63 }
 0x152   :  { %590 = vmatprep.mubr.bf16.mxu1 %v2231_v17  ;;  %703 = vmatprep.mubr.bf16.mxu0 %v2231_v17  ;;  %v2162_v17 = vld [vmem:[%s2810_s4 + $0xa8] sm:$0xff]  }
 0x159   :  { %591 = vmatmul.mubr.bf16.gmra.mrb[28].mxu1 %v2489_v61  ;;  %704 = vmatmul.mubr.bf16.gmra.mrb[44].mxu0 %v2489_v61 }
 0x15a   :  { %1998 = vmatprep.mubr.bf16.mxu1 %v2421_v25  ;;  %v2170_v25 = vld [vmem:[%s2810_s4 + $0xb8] sm:$0xff]  }
 0x161   :  { %1999 = vmatmul.mubr.bf16.vlgmr.msra.gmra.mrb[32].mxu1 %v2419_v23  ;;  %v2168_v23 = vld [vmem:[%s2810_s4 + $0xf8] sm:$0xff]  }
 0x162   :  { %2002 = vmatprep.mubr.bf16.mxu1 %v2447_v37  ;;  %1855 = vmatpush3.bf16.msra.mxu1 %v2142_v2  ;;  %v2590_v37 = vrot.slane %v253_v30, %v265_v33 }
 0x163   :  { %1856 = vmatprep.subr.bf16.mxu1 %v2144_v4 }
 0x166   :  { %1857 = vmatpush3.bf16.msra.mxu1 %v2146_v6 }
 0x167   :  { %1858 = vmatprep.subr.bf16.mxu1 %v2148_v7 }
 0x169   :  { %2003 = vmatmul.mubr.bf16.gmra.mrb[36].mxu1 %v2445_v35  ;;  %v269_v35 = vsub.s32 3, %v256_v28 }
 0x16a   :  { %2006 = vmatprep.mubr.bf16.mxu1 %v201_v51  ;;  %1859 = vmatpush3.bf16.msra.mxu1 %v2150_v8 }
 0x16b   :  { %1860 = vmatprep.subr.bf16.mxu1 %v2152_v9  ;;  %v2594_v39 = vrot.slane %v253_v30, %v269_v35  ;;  %v2173_v35 = vld [vmem:[%s2810_s4 + $0x110] sm:$0xff]  }
 0x16e   :  { %1861 = vmatpush3.bf16.msra.mxu1 %v2154_v10 }
 0x16f   :  { %1862 = vmatprep.subr.bf16.mxu1 %v2156_v12 }
 0x171   :  { %2007 = vmatmul.mubr.bf16.gmra.mrb[40].mxu1 %v2471_v49 }
 0x172   :  { %2010 = vmatprep.mubr.bf16.mxu1 %v203_v63  ;;  %1863 = vmatpush3.bf16.msra.mxu1 %v2158_v14 }
 0x173   :  { %1864 = vmatprep.subr.bf16.mxu1 %v2160_v15 }
 0x176   :  { %1865 = vmatpush3.bf16.msra.mxu1 %v2162_v17 }
 0x177   :  { %1866 = vmatprep.subr.bf16.mxu1 %v2164_v19 }
 0x179   :  { %2011 = vmatmul.mubr.bf16.gmra.mrb[44].mxu1 %v2489_v61 }
 0x17a   :  { %1867 = vmatpush3.bf16.msra.mxu1 %v2166_v21 }
 0x17b   :  { %1868 = vmatprep.subr.bf16.mxu1 %v2168_v23 }
 0x17e   :  { %1869 = vmatpush3.bf16.msra.mxu1 %v2170_v25 }
 0x1f4   :  { %v522_v40 = vpop.f32.mrb[0].mxu1  ;;  %v635_v41 = vpop.f32.mrb[16].mxu0 }
 0x1f5   :  { %v523_v42 = vadd.f32 %v522_v40, %v2588_v36  ;;  %v636_v43 = vadd.f32 %v635_v41, %v2590_v37  ;;  %v524_v44 = vpop.f32.mrb[1].mxu1  ;;  %v637_v46 = vpop.f32.mrb[17].mxu0 }
 0x1f6   :  { %v525_v47 = vadd.f32 %v524_v44, %v2592_v38  ;;  %v638_v49 = vadd.f32 %v637_v46, %v2594_v39  ;;  %v526_v50 = vpop.f32.mrb[2].mxu1  ;;  %v639_v51 = vpop.f32.mrb[18].mxu0 }
 0x1f7   :  { %v527_v52 = vadd.f32 %v526_v50, %v2588_v36  ;;  %v640_v53 = vadd.f32 %v639_v51, %v2590_v37  ;;  %v528_v54 = vpop.f32.mrb[3].mxu1  ;;  %v641_v55 = vpop.f32.mrb[19].mxu0  ;;  %v811_v60 = vmax.f32 %v523_v42, 0.0  ;;  %v813_v61 = vmax.f32 %v636_v43, 0.0 }
 0x1f8   :  { %v529_v56 = vadd.f32 %v528_v54, %v2592_v38  ;;  %v642_v58 = vadd.f32 %v641_v55, %v2594_v39  ;;  %v812_v0 = vmax.f32 %v525_v47, 0.0  ;;  %v814_v1 = vmax.f32 %v638_v49, 0.0  ;;  %v2174_v55 = vld [vmem:[%s2810_s4 + $0x118] sm:$0xff]  }
 0x1f9   :  { %v816_v62 = vmax.f32 %v527_v52, 0.0  ;;  %v818_v63 = vmax.f32 %v640_v53, 0.0 }
 0x1fa   :  { %v817_v2 = vmax.f32 %v529_v56, 0.0  ;;  %v819_v4 = vmax.f32 %v642_v58, 0.0 }
 0x1fb   :  { %v891_v6 = vpack.c.bf16 %v816_v62, %v811_v60  ;;  %v893_v7 = vpack.c.bf16 %v818_v63, %v813_v61 }
 0x1fc   :  { %v892_v8 = vpack.c.bf16 %v817_v2, %v812_v0  ;;  %v894_v9 = vpack.c.bf16 %v819_v4, %v814_v1  ;;  %v532_v10 = vpop.f32.mrb[4].mxu1  ;;  %v645_v12 = vpop.f32.mrb[20].mxu0 }
 0x1fd   :  { %v533_v14 = vadd.f32 %v532_v10, %v2588_v36  ;;  %v646_v15 = vadd.f32 %v645_v12, %v2590_v37  ;;  %v534_v16 = vpop.f32.mrb[5].mxu1  ;;  %v647_v17 = vpop.f32.mrb[21].mxu0  ;;  %v2175_v10 = vld [vmem:[%s2810_s4 + $0x120] sm:$0xff]  }
 0x1fe   :  { %v535_v19 = vadd.f32 %v534_v16, %v2592_v38  ;;  %v648_v20 = vadd.f32 %v647_v17, %v2594_v39  ;;  %v536_v21 = vpop.f32.mrb[6].mxu1  ;;  %v649_v22 = vpop.f32.mrb[22].mxu0  ;;  %1283 = vmatprep.mubr.bf16.mxu0 %v892_v8  ;;  %1380 = vmatprep.mubr.bf16.mxu1 %v894_v9 }
 0x1ff   :  { %v537_v23 = vadd.f32 %v536_v21, %v2588_v36  ;;  %v650_v24 = vadd.f32 %v649_v22, %v2590_v37  ;;  %v538_v25 = vpop.f32.mrb[7].mxu1  ;;  %v651_v27 = vpop.f32.mrb[23].mxu0  ;;  %1284 = vmatmul.mubr.bf16.vlgmr.msra.gmra.mrb[48].mxu0 %v891_v6  ;;  %1381 = vmatmul.mubr.bf16.vlgmr.msra.gmra.mrb[48].mxu1 %v893_v7  ;;  %v821_v30 = vmax.f32 %v533_v14, 0.0  ;;  %v823_v32 = vmax.f32 %v646_v15, 0.0 }
 0x200   :  { %v539_v28 = vadd.f32 %v538_v25, %v2592_v38  ;;  %v652_v29 = vadd.f32 %v651_v27, %v2594_v39  ;;  %2015 = vmatpush3.bf16.msra.mxu0 %v2580_v26  ;;  %v822_v40 = vmax.f32 %v535_v19, 0.0  ;;  %v824_v41 = vmax.f32 %v648_v20, 0.0 }
 0x201   :  { %v826_v33 = vmax.f32 %v537_v23, 0.0  ;;  %v828_v34 = vmax.f32 %v650_v24, 0.0  ;;  %2016 = vmatprep.subr.bf16.mxu0 %v2172_v18 }
 0x202   :  { %v827_v42 = vmax.f32 %v539_v28, 0.0  ;;  %v829_v43 = vmax.f32 %v652_v29, 0.0  ;;  %v2176_v28 = vld [vmem:[%s2810_s4 + $0x128] sm:$0xff]  }
 0x203   :  { %v896_v44 = vpack.c.bf16 %v826_v33, %v821_v30  ;;  %v898_v46 = vpack.c.bf16 %v828_v34, %v823_v32 }
 0x204   :  { %v897_v47 = vpack.c.bf16 %v827_v42, %v822_v40  ;;  %v899_v49 = vpack.c.bf16 %v829_v43, %v824_v41  ;;  %v542_v50 = vpop.f32.mrb[8].mxu1  ;;  %v655_v51 = vpop.f32.mrb[24].mxu0  ;;  %2017 = vmatpush3.bf16.msra.mxu0 %v2172_v18 }
 0x205   :  { %v543_v26 = vadd.f32 %v542_v50, %v2588_v36  ;;  %v656_v52 = vadd.f32 %v655_v51, %v2590_v37  ;;  %v544_v53 = vpop.f32.mrb[9].mxu1  ;;  %v657_v54 = vpop.f32.mrb[25].mxu0  ;;  %2018 = vmatprep.subr.bf16.mxu0 %v2173_v35  ;;  %v2177_v50 = vld [vmem:[%s2810_s4 + $0x130] sm:$0xff]  }
 0x206   :  { %v545_v56 = vadd.f32 %v544_v53, %v2592_v38  ;;  %v658_v58 = vadd.f32 %v657_v54, %v2594_v39  ;;  %v546_v60 = vpop.f32.mrb[10].mxu1  ;;  %v659_v61 = vpop.f32.mrb[26].mxu0  ;;  %1291 = vmatprep.mubr.bf16.mxu0 %v897_v47  ;;  %1388 = vmatprep.mubr.bf16.mxu1 %v899_v49 }
 0x207   :  { %v547_v62 = vadd.f32 %v546_v60, %v2588_v36  ;;  %v660_v63 = vadd.f32 %v659_v61, %v2590_v37  ;;  %v548_v0 = vpop.f32.mrb[11].mxu1  ;;  %v661_v1 = vpop.f32.mrb[27].mxu0  ;;  %1292 = vmatmul.mubr.bf16.gmra.mrb[52].mxu0 %v896_v44  ;;  %1389 = vmatmul.mubr.bf16.gmra.mrb[52].mxu1 %v898_v46  ;;  %v831_v6 = vmax.f32 %v543_v26, 0.0  ;;  %v833_v7 = vmax.f32 %v656_v52, 0.0 }
 0x208   :  { %v549_v2 = vadd.f32 %v548_v0, %v2592_v38  ;;  %v662_v4 = vadd.f32 %v661_v1, %v2594_v39  ;;  %2019 = vmatpush3.bf16.msra.mxu0 %v2173_v35  ;;  %v832_v12 = vmax.f32 %v545_v56, 0.0  ;;  %v834_v14 = vmax.f32 %v658_v58, 0.0 }
 0x209   :  { %v836_v8 = vmax.f32 %v547_v62, 0.0  ;;  %v838_v9 = vmax.f32 %v660_v63, 0.0  ;;  %2020 = vmatprep.subr.bf16.mxu0 %v2174_v55 }
 0x20a   :  { %v837_v15 = vmax.f32 %v549_v2, 0.0  ;;  %v839_v16 = vmax.f32 %v662_v4, 0.0  ;;  %v2178_v2 = vld [vmem:[%s2810_s4 + $0x138] sm:$0xff]  }
 0x20b   :  { %v901_v17 = vpack.c.bf16 %v836_v8, %v831_v6  ;;  %v903_v18 = vpack.c.bf16 %v838_v9, %v833_v7 }
 0x20c   :  { %v902_v19 = vpack.c.bf16 %v837_v15, %v832_v12  ;;  %v904_v20 = vpack.c.bf16 %v839_v16, %v834_v14  ;;  %v552_v21 = vpop.f32.mrb[12].mxu1  ;;  %v665_v22 = vpop.f32.mrb[28].mxu0  ;;  %2021 = vmatpush3.bf16.msra.mxu0 %v2174_v55 }
 0x20d   :  { %v553_v23 = vadd.f32 %v552_v21, %v2588_v36  ;;  %v666_v24 = vadd.f32 %v665_v22, %v2590_v37  ;;  %v554_v25 = vpop.f32.mrb[13].mxu1  ;;  %v667_v27 = vpop.f32.mrb[29].mxu0  ;;  %2022 = vmatprep.subr.bf16.mxu0 %v2175_v10 }
 0x20e   :  { %v555_v29 = vadd.f32 %v554_v25, %v2592_v38  ;;  %v668_v30 = vadd.f32 %v667_v27, %v2594_v39  ;;  %v556_v32 = vpop.f32.mrb[14].mxu1  ;;  %v669_v33 = vpop.f32.mrb[30].mxu0  ;;  %1299 = vmatprep.mubr.bf16.mxu0 %v902_v19  ;;  %1396 = vmatprep.mubr.bf16.mxu1 %v904_v20 }
 0x20f   :  { %v557_v34 = vadd.f32 %v556_v32, %v2588_v36  ;;  %v670_v35 = vadd.f32 %v669_v33, %v2590_v37  ;;  %v558_v40 = vpop.f32.mrb[15].mxu1  ;;  %v671_v41 = vpop.f32.mrb[31].mxu0  ;;  %1300 = vmatmul.mubr.bf16.gmra.mrb[56].mxu0 %v901_v17  ;;  %1397 = vmatmul.mubr.bf16.gmra.mrb[56].mxu1 %v903_v18  ;;  %v841_v44 = vmax.f32 %v553_v23, 0.0  ;;  %v843_v46 = vmax.f32 %v666_v24, 0.0 }
 0x210   :  { %v559_v42 = vadd.f32 %v558_v40, %v2592_v38  ;;  %v672_v43 = vadd.f32 %v671_v41, %v2594_v39  ;;  %2023 = vmatpush3.bf16.msra.mxu0 %v2175_v10  ;;  %v842_v51 = vmax.f32 %v555_v29, 0.0  ;;  %v844_v26 = vmax.f32 %v668_v30, 0.0 }
 0x211   :  { %v846_v47 = vmax.f32 %v557_v34, 0.0  ;;  %v848_v49 = vmax.f32 %v670_v35, 0.0  ;;  %2024 = vmatprep.subr.bf16.mxu0 %v2176_v28 }
 0x212   :  { %v847_v52 = vmax.f32 %v559_v42, 0.0  ;;  %v849_v53 = vmax.f32 %v672_v43, 0.0 }
 0x213   :  { %v906_v54 = vpack.c.bf16 %v846_v47, %v841_v44  ;;  %v908_v55 = vpack.c.bf16 %v848_v49, %v843_v46 }
 0x214   :  { %v907_v56 = vpack.c.bf16 %v847_v52, %v842_v51  ;;  %v909_v58 = vpack.c.bf16 %v849_v53, %v844_v26  ;;  %v562_v60 = vpop.f32.mrb[16].mxu1  ;;  %v675_v61 = vpop.f32.mrb[32].mxu0  ;;  %2025 = vmatpush3.bf16.msra.mxu0 %v2176_v28 }
 0x215   :  { %v563_v62 = vadd.f32 %v562_v60, %v2588_v36  ;;  %v676_v63 = vadd.f32 %v675_v61, %v2590_v37  ;;  %v564_v0 = vpop.f32.mrb[17].mxu1  ;;  %v677_v1 = vpop.f32.mrb[33].mxu0  ;;  %2026 = vmatprep.subr.bf16.mxu0 %v2177_v50 }
 0x216   :  { %v565_v4 = vadd.f32 %v564_v0, %v2592_v38  ;;  %v678_v6 = vadd.f32 %v677_v1, %v2594_v39  ;;  %v566_v7 = vpop.f32.mrb[18].mxu1  ;;  %v679_v8 = vpop.f32.mrb[34].mxu0  ;;  %1307 = vmatprep.mubr.bf16.mxu0 %v907_v56  ;;  %1404 = vmatprep.mubr.bf16.mxu1 %v909_v58 }
 0x217   :  { %v567_v9 = vadd.f32 %v566_v7, %v2588_v36  ;;  %v680_v10 = vadd.f32 %v679_v8, %v2590_v37  ;;  %v568_v12 = vpop.f32.mrb[19].mxu1  ;;  %v681_v14 = vpop.f32.mrb[35].mxu0  ;;  %1308 = vmatmul.mubr.bf16.gmra.mrb[60].mxu0 %v906_v54  ;;  %1405 = vmatmul.mubr.bf16.gmra.mrb[60].mxu1 %v908_v55  ;;  %v851_v17 = vmax.f32 %v563_v62, 0.0  ;;  %v853_v18 = vmax.f32 %v676_v63, 0.0 }
 0x218   :  { %v569_v15 = vadd.f32 %v568_v12, %v2592_v38  ;;  %v682_v16 = vadd.f32 %v681_v14, %v2594_v39  ;;  %2027 = vmatpush3.bf16.msra.mxu0 %v2177_v50  ;;  %v852_v21 = vmax.f32 %v565_v4, 0.0  ;;  %v854_v22 = vmax.f32 %v678_v6, 0.0 }
 0x219   :  { %v856_v19 = vmax.f32 %v567_v9, 0.0  ;;  %v858_v20 = vmax.f32 %v680_v10, 0.0  ;;  %2028 = vmatprep.subr.bf16.mxu0 %v2178_v2 }
 0x21a   :  { %v857_v23 = vmax.f32 %v569_v15, 0.0  ;;  %v859_v24 = vmax.f32 %v682_v16, 0.0 }
 0x21b   :  { %v911_v25 = vpack.c.bf16 %v856_v19, %v851_v17  ;;  %v913_v27 = vpack.c.bf16 %v858_v20, %v853_v18 }
 0x21c   :  { %v912_v28 = vpack.c.bf16 %v857_v23, %v852_v21  ;;  %v914_v29 = vpack.c.bf16 %v859_v24, %v854_v22  ;;  %v572_v30 = vpop.f32.mrb[20].mxu1  ;;  %v685_v32 = vpop.f32.mrb[36].mxu0  ;;  %2029 = vmatpush3.bf16.msra.mxu0 %v2178_v2 }
 0x21d   :  { %v573_v33 = vadd.f32 %v572_v30, %v2588_v36  ;;  %v686_v34 = vadd.f32 %v685_v32, %v2590_v37  ;;  %v574_v35 = vpop.f32.mrb[21].mxu1  ;;  %v687_v40 = vpop.f32.mrb[37].mxu0 }
 0x21e   :  { %v575_v41 = vadd.f32 %v574_v35, %v2592_v38  ;;  %v688_v42 = vadd.f32 %v687_v40, %v2594_v39  ;;  %v576_v43 = vpop.f32.mrb[22].mxu1  ;;  %v689_v44 = vpop.f32.mrb[38].mxu0  ;;  %1315 = vmatprep.mubr.bf16.mxu0 %v912_v28  ;;  %1412 = vmatprep.mubr.bf16.mxu1 %v914_v29 }
 0x21f   :  { %v577_v46 = vadd.f32 %v576_v43, %v2588_v36  ;;  %v690_v47 = vadd.f32 %v689_v44, %v2590_v37  ;;  %v578_v49 = vpop.f32.mrb[23].mxu1  ;;  %v691_v50 = vpop.f32.mrb[39].mxu0  ;;  %1316 = vmatmul.mubr.bf16.gmra.mrb[64].mxu0 %v911_v25  ;;  %1413 = vmatmul.mubr.bf16.gmra.mrb[64].mxu1 %v913_v27  ;;  %v861_v52 = vmax.f32 %v573_v33, 0.0  ;;  %v863_v53 = vmax.f32 %v686_v34, 0.0 }
 0x220   :  { %v579_v51 = vadd.f32 %v578_v49, %v2592_v38  ;;  %v692_v26 = vadd.f32 %v691_v50, %v2594_v39  ;;  %v862_v56 = vmax.f32 %v575_v41, 0.0  ;;  %v864_v58 = vmax.f32 %v688_v42, 0.0 }
 0x221   :  { %v866_v54 = vmax.f32 %v577_v46, 0.0  ;;  %v868_v55 = vmax.f32 %v690_v47, 0.0 }
 0x222   :  { %v867_v60 = vmax.f32 %v579_v51, 0.0  ;;  %v869_v61 = vmax.f32 %v692_v26, 0.0 }
 0x223   :  { %v916_v62 = vpack.c.bf16 %v866_v54, %v861_v52  ;;  %v918_v63 = vpack.c.bf16 %v868_v55, %v863_v53 }
 0x224   :  { %v917_v0 = vpack.c.bf16 %v867_v60, %v862_v56  ;;  %v919_v1 = vpack.c.bf16 %v869_v61, %v864_v58  ;;  %v582_v2 = vpop.f32.mrb[24].mxu1  ;;  %v695_v4 = vpop.f32.mrb[40].mxu0 }
 0x225   :  { %v583_v6 = vadd.f32 %v582_v2, %v2588_v36  ;;  %v696_v7 = vadd.f32 %v695_v4, %v2590_v37  ;;  %v584_v8 = vpop.f32.mrb[25].mxu1  ;;  %v697_v9 = vpop.f32.mrb[41].mxu0 }
 0x226   :  { %v585_v10 = vadd.f32 %v584_v8, %v2592_v38  ;;  %v698_v12 = vadd.f32 %v697_v9, %v2594_v39  ;;  %v586_v14 = vpop.f32.mrb[26].mxu1  ;;  %v699_v15 = vpop.f32.mrb[42].mxu0  ;;  %1323 = vmatprep.mubr.bf16.mxu0 %v917_v0  ;;  %1420 = vmatprep.mubr.bf16.mxu1 %v919_v1 }
 0x227   :  { %v587_v16 = vadd.f32 %v586_v14, %v2588_v36  ;;  %v700_v17 = vadd.f32 %v699_v15, %v2590_v37  ;;  %v588_v18 = vpop.f32.mrb[27].mxu1  ;;  %v701_v19 = vpop.f32.mrb[43].mxu0  ;;  %1324 = vmatmul.mubr.bf16.gmra.mrb[68].mxu0 %v916_v62  ;;  %1421 = vmatmul.mubr.bf16.gmra.mrb[68].mxu1 %v918_v63  ;;  %v871_v22 = vmax.f32 %v583_v6, 0.0  ;;  %v873_v23 = vmax.f32 %v696_v7, 0.0 }
 0x228   :  { %v589_v20 = vadd.f32 %v588_v18, %v2592_v38  ;;  %v702_v21 = vadd.f32 %v701_v19, %v2594_v39  ;;  %v872_v27 = vmax.f32 %v585_v10, 0.0  ;;  %v874_v28 = vmax.f32 %v698_v12, 0.0 }
 0x229   :  { %v876_v24 = vmax.f32 %v587_v16, 0.0  ;;  %v878_v25 = vmax.f32 %v700_v17, 0.0 }
 0x22a   :  { %v877_v29 = vmax.f32 %v589_v20, 0.0  ;;  %v879_v30 = vmax.f32 %v702_v21, 0.0 }
 0x22b   :  { %v921_v32 = vpack.c.bf16 %v876_v24, %v871_v22  ;;  %v923_v33 = vpack.c.bf16 %v878_v25, %v873_v23 }
 0x22c   :  { %v922_v34 = vpack.c.bf16 %v877_v29, %v872_v27  ;;  %v924_v35 = vpack.c.bf16 %v879_v30, %v874_v28  ;;  %v592_v40 = vpop.f32.mrb[28].mxu1  ;;  %v705_v41 = vpop.f32.mrb[44].mxu0 }
 0x22d   :  { %v593_v42 = vadd.f32 %v592_v40, %v2588_v36  ;;  %v706_v43 = vadd.f32 %v705_v41, %v2590_v37  ;;  %v594_v44 = vpop.f32.mrb[29].mxu1  ;;  %v707_v46 = vpop.f32.mrb[45].mxu0 }
 0x22e   :  { %v595_v47 = vadd.f32 %v594_v44, %v2592_v38  ;;  %v708_v49 = vadd.f32 %v707_v46, %v2594_v39  ;;  %v596_v50 = vpop.f32.mrb[30].mxu1  ;;  %v709_v51 = vpop.f32.mrb[46].mxu0  ;;  %1331 = vmatprep.mubr.bf16.mxu0 %v922_v34  ;;  %1428 = vmatprep.mubr.bf16.mxu1 %v924_v35 }
 0x22f   :  { %v597_v26 = vadd.f32 %v596_v50, %v2588_v36  ;;  %v710_v52 = vadd.f32 %v709_v51, %v2590_v37  ;;  %v598_v53 = vpop.f32.mrb[31].mxu1  ;;  %v711_v54 = vpop.f32.mrb[47].mxu0  ;;  %1332 = vmatmul.mubr.bf16.gmra.mrb[72].mxu0 %v921_v32  ;;  %1429 = vmatmul.mubr.bf16.gmra.mrb[72].mxu1 %v923_v33  ;;  %v881_v58 = vmax.f32 %v593_v42, 0.0  ;;  %v883_v60 = vmax.f32 %v706_v43, 0.0 }
 0x230   :  { %v599_v55 = vadd.f32 %v598_v53, %v2592_v38  ;;  %v712_v56 = vadd.f32 %v711_v54, %v2594_v39  ;;  %v882_v63 = vmax.f32 %v595_v47, 0.0  ;;  %v884_v0 = vmax.f32 %v708_v49, 0.0 }
 0x231   :  { %v886_v61 = vmax.f32 %v597_v26, 0.0  ;;  %v888_v62 = vmax.f32 %v710_v52, 0.0 }
 0x232   :  { %v887_v1 = vmax.f32 %v599_v55, 0.0  ;;  %v889_v2 = vmax.f32 %v712_v56, 0.0 }
 0x233   :  { %v926_v4 = vpack.c.bf16 %v886_v61, %v881_v58  ;;  %v928_v36 = vpack.c.bf16 %v888_v62, %v883_v60 }
 0x234   :  { %v927_v6 = vpack.c.bf16 %v887_v1, %v882_v63  ;;  %v929_v37 = vpack.c.bf16 %v889_v2, %v884_v0  ;;  %v2000_v7 = vpop.f32.mrb[32].mxu1 }
 0x235   :  { %v757_v8 = vadd.f32 %v2000_v7, %v2586_v31  ;;  %v748_v9 = vpop.f32.mrb[33].mxu1 }
 0x236   :  { %v749_v38 = vadd.f32 %v748_v9, %v2586_v31  ;;  %v2001_v10 = vpop.f32.mrb[34].mxu1  ;;  %1339 = vmatprep.mubr.bf16.mxu0 %v927_v6  ;;  %1436 = vmatprep.mubr.bf16.mxu1 %v929_v37 }
 0x237   :  { %v760_v39 = vadd.f32 %v2001_v10, %v2586_v31  ;;  %v751_v12 = vpop.f32.mrb[35].mxu1  ;;  %1340 = vmatmul.mubr.bf16.gmra.mrb[76].mxu0 %v926_v4  ;;  %1437 = vmatmul.mubr.bf16.gmra.mrb[76].mxu1 %v928_v36  ;;  %v825_v15 = vmax.f32 %v757_v8, 0.0 }
 0x238   :  { %v752_v14 = vadd.f32 %v751_v12, %v2586_v31  ;;  %2062 = vmatprep.mubr.bf16.mxu1 %v2291_v13  ;;  %v815_v17 = vmax.f32 %v749_v38, 0.0 }
 0x239   :  { %v830_v16 = vmax.f32 %v760_v39, 0.0 }
 0x23a   :  { %v820_v18 = vmax.f32 %v752_v14, 0.0 }
 0x23b   :  { %v900_v19 = vpack.c.bf16 %v830_v16, %v825_v15 }
 0x23c   :  { %v895_v20 = vpack.c.bf16 %v820_v18, %v815_v17  ;;  %v2004_v21 = vpop.f32.mrb[36].mxu1 }
 0x23d   :  { %v773_v22 = vadd.f32 %v2004_v21, %v2586_v31  ;;  %v764_v23 = vpop.f32.mrb[37].mxu1 }
 0x23e   :  { %v765_v24 = vadd.f32 %v764_v23, %v2586_v31  ;;  %v2005_v25 = vpop.f32.mrb[38].mxu1  ;;  %2030 = vmatprep.mubr.bf16.mxu0 %v895_v20 }
 0x23f   :  { %v776_v27 = vadd.f32 %v2005_v25, %v2586_v31  ;;  %v767_v28 = vpop.f32.mrb[39].mxu1  ;;  %2031 = vmatmul.mubr.bf16.vlgmr.msra.gmra.mrb[80].mxu0 %v900_v19  ;;  %v845_v29 = vmax.f32 %v773_v22, 0.0 }
 0x240   :  { %v768_v13 = vadd.f32 %v767_v28, %v2586_v31  ;;  %v835_v32 = vmax.f32 %v765_v24, 0.0 }
 0x241   :  { %v850_v30 = vmax.f32 %v776_v27, 0.0 }
 0x242   :  { %v840_v33 = vmax.f32 %v768_v13, 0.0 }
 0x243   :  { %v910_v34 = vpack.c.bf16 %v850_v30, %v845_v29 }
 0x244   :  { %v905_v35 = vpack.c.bf16 %v840_v33, %v835_v32  ;;  %v2008_v40 = vpop.f32.mrb[40].mxu1 }
 0x245   :  { %v789_v41 = vadd.f32 %v2008_v40, %v2586_v31  ;;  %v780_v42 = vpop.f32.mrb[41].mxu1 }
 0x246   :  { %v781_v43 = vadd.f32 %v780_v42, %v2586_v31  ;;  %v2009_v44 = vpop.f32.mrb[42].mxu1  ;;  %2034 = vmatprep.mubr.bf16.mxu0 %v905_v35 }
 0x247   :  { %v792_v46 = vadd.f32 %v2009_v44, %v2586_v31  ;;  %v783_v47 = vpop.f32.mrb[43].mxu1  ;;  %2035 = vmatmul.mubr.bf16.gmra.mrb[84].mxu0 %v910_v34  ;;  %v865_v50 = vmax.f32 %v789_v41, 0.0 }
 0x248   :  { %v784_v49 = vadd.f32 %v783_v47, %v2586_v31  ;;  %v855_v26 = vmax.f32 %v781_v43, 0.0 }
 0x249   :  { %v870_v51 = vmax.f32 %v792_v46, 0.0 }
 0x24a   :  { %v860_v52 = vmax.f32 %v784_v49, 0.0 }
 0x24b   :  { %v920_v53 = vpack.c.bf16 %v870_v51, %v865_v50 }
 0x24c   :  { %v915_v54 = vpack.c.bf16 %v860_v52, %v855_v26  ;;  %v2012_v55 = vpop.f32.mrb[44].mxu1 }
 0x24d   :  { %v805_v56 = vadd.f32 %v2012_v55, %v2586_v31  ;;  %v796_v58 = vpop.f32.mrb[45].mxu1 }
 0x24e   :  { %v797_v60 = vadd.f32 %v796_v58, %v2586_v31  ;;  %v2013_v61 = vpop.f32.mrb[46].mxu1  ;;  %2038 = vmatprep.mubr.bf16.mxu0 %v915_v54 }
 0x24f   :  { %v808_v62 = vadd.f32 %v2013_v61, %v2586_v31  ;;  %v799_v63 = vpop.f32.mrb[47].mxu1  ;;  %2039 = vmatmul.mubr.bf16.gmra.mrb[88].mxu0 %v920_v53  ;;  %v885_v1 = vmax.f32 %v805_v56, 0.0 }
 0x250   :  { %v800_v0 = vadd.f32 %v799_v63, %v2586_v31  ;;  %v875_v4 = vmax.f32 %v797_v60, 0.0 }
 0x251   :  { %v890_v2 = vmax.f32 %v808_v62, 0.0 }
 0x252   :  { %v880_v36 = vmax.f32 %v800_v0, 0.0 }
 0x253   :  { %v930_v6 = vpack.c.bf16 %v890_v2, %v885_v1 }
 0x254   :  { %v925_v37 = vpack.c.bf16 %v880_v36, %v875_v4 }
 0x256   :  { %2042 = vmatprep.mubr.bf16.mxu0 %v925_v37 }
 0x257   :  { %2043 = vmatmul.mubr.bf16.gmra.mrb[92].mxu0 %v930_v6 }
 0x2d2   :  { %v1806_v7 = vpop.f32.mrb[48].mxu0  ;;  %v1870_v8 = vpop.f32.mrb[48].mxu1 }
 0x2d3   :  { %v1807_v9 = vpop.f32.mrb[49].mxu0  ;;  %v1871_v38 = vpop.f32.mrb[49].mxu1 }
 0x2d4   :  { %v1808_v10 = vadd.f32 %v1807_v9, %v1806_v7  ;;  %v1872_v39 = vadd.f32 %v1871_v38, %v1870_v8  ;;  %v1809_v12 = vpop.f32.mrb[50].mxu0  ;;  %v1873_v14 = vpop.f32.mrb[50].mxu1 }
 0x2d5   :  { %v1810_v15 = vpop.f32.mrb[51].mxu0  ;;  %v1874_v16 = vpop.f32.mrb[51].mxu1 }
 0x2d6   :  { %v1811_v17 = vadd.f32 %v1810_v15, %v1809_v12  ;;  %v1875_v31 = vadd.f32 %v1874_v16, %v1873_v14  ;;  %v2699_v18 = vadd.f32 %v1872_v39, %v1808_v10 }
 0x2d8   :  { %v2701_v19 = vadd.f32 %v1875_v31, %v1811_v17 }
 0x2da   :  { %v1812_v20 = vpop.f32.mrb[52].mxu0  ;;  %v1876_v21 = vpop.f32.mrb[52].mxu1 }
 0x2db   :  { %v1813_v22 = vpop.f32.mrb[53].mxu0  ;;  %v1877_v23 = vpop.f32.mrb[53].mxu1 }
 0x2dc   :  { %v1814_v24 = vadd.f32 %v1813_v22, %v1812_v20  ;;  %v1878_v25 = vadd.f32 %v1877_v23, %v1876_v21  ;;  %v1815_v27 = vpop.f32.mrb[54].mxu0  ;;  %v1879_v28 = vpop.f32.mrb[54].mxu1 }
 0x2dd   :  { %v1816_v13 = vpop.f32.mrb[55].mxu0  ;;  %v1880_v29 = vpop.f32.mrb[55].mxu1 }
 0x2de   :  { %v1817_v30 = vadd.f32 %v1816_v13, %v1815_v27  ;;  %v1881_v32 = vadd.f32 %v1880_v29, %v1879_v28  ;;  %v2703_v33 = vadd.f32 %v1878_v25, %v1814_v24 }
 0x2e0   :  { %v2705_v34 = vadd.f32 %v1881_v32, %v1817_v30 }
 0x2e2   :  { %v1818_v35 = vpop.f32.mrb[56].mxu0  ;;  %v1882_v40 = vpop.f32.mrb[56].mxu1 }
 0x2e3   :  { %v1819_v41 = vpop.f32.mrb[57].mxu0  ;;  %v1883_v42 = vpop.f32.mrb[57].mxu1 }
 0x2e4   :  { %v1820_v43 = vadd.f32 %v1819_v41, %v1818_v35  ;;  %v1884_v44 = vadd.f32 %v1883_v42, %v1882_v40  ;;  %v1821_v46 = vpop.f32.mrb[58].mxu0  ;;  %v1885_v47 = vpop.f32.mrb[58].mxu1 }
 0x2e5   :  { %v1822_v49 = vpop.f32.mrb[59].mxu0  ;;  %v1886_v50 = vpop.f32.mrb[59].mxu1 }
 0x2e6   :  { %v1823_v51 = vadd.f32 %v1822_v49, %v1821_v46  ;;  %v1887_v26 = vadd.f32 %v1886_v50, %v1885_v47  ;;  %v2707_v52 = vadd.f32 %v1884_v44, %v1820_v43 }
 0x2e8   :  { %v2709_v53 = vadd.f32 %v1887_v26, %v1823_v51 }
 0x2ea   :  { %v1824_v54 = vpop.f32.mrb[60].mxu0  ;;  %v1888_v55 = vpop.f32.mrb[60].mxu1 }
 0x2eb   :  { %v1825_v56 = vpop.f32.mrb[61].mxu0  ;;  %v1889_v58 = vpop.f32.mrb[61].mxu1 }
 0x2ec   :  { %v1826_v60 = vadd.f32 %v1825_v56, %v1824_v54  ;;  %v1890_v61 = vadd.f32 %v1889_v58, %v1888_v55  ;;  %v1827_v62 = vpop.f32.mrb[62].mxu0  ;;  %v1891_v63 = vpop.f32.mrb[62].mxu1 }
 0x2ed   :  { %v1828_v0 = vpop.f32.mrb[63].mxu0  ;;  %v1892_v1 = vpop.f32.mrb[63].mxu1 }
 0x2ee   :  { %v1829_v2 = vadd.f32 %v1828_v0, %v1827_v62  ;;  %v1893_v4 = vadd.f32 %v1892_v1, %v1891_v63  ;;  %v2711_v36 = vadd.f32 %v1890_v61, %v1826_v60 }
 0x2f0   :  { %v2713_v6 = vadd.f32 %v1893_v4, %v1829_v2 }
 0x2f2   :  { %v1830_v37 = vpop.f32.mrb[64].mxu0  ;;  %v1894_v7 = vpop.f32.mrb[64].mxu1 }
 0x2f3   :  { %v1831_v8 = vpop.f32.mrb[65].mxu0  ;;  %v1895_v9 = vpop.f32.mrb[65].mxu1 }
 0x2f4   :  { %v1832_v38 = vadd.f32 %v1831_v8, %v1830_v37  ;;  %v1896_v10 = vadd.f32 %v1895_v9, %v1894_v7  ;;  %v1833_v39 = vpop.f32.mrb[66].mxu0  ;;  %v1897_v12 = vpop.f32.mrb[66].mxu1 }
 0x2f5   :  { %v1834_v14 = vpop.f32.mrb[67].mxu0  ;;  %v1898_v15 = vpop.f32.mrb[67].mxu1 }
 0x2f6   :  { %v1835_v16 = vadd.f32 %v1834_v14, %v1833_v39  ;;  %v1899_v17 = vadd.f32 %v1898_v15, %v1897_v12  ;;  %v2715_v31 = vadd.f32 %v1896_v10, %v1832_v38 }
 0x2f8   :  { %v2717_v20 = vadd.f32 %v1899_v17, %v1835_v16 }
 0x2fa   :  { %v1836_v21 = vpop.f32.mrb[68].mxu0  ;;  %v1900_v22 = vpop.f32.mrb[68].mxu1 }
 0x2fb   :  { %v1837_v23 = vpop.f32.mrb[69].mxu0  ;;  %v1901_v24 = vpop.f32.mrb[69].mxu1 }
 0x2fc   :  { %v1838_v25 = vadd.f32 %v1837_v23, %v1836_v21  ;;  %v1902_v27 = vadd.f32 %v1901_v24, %v1900_v22  ;;  %v1839_v28 = vpop.f32.mrb[70].mxu0  ;;  %v1903_v13 = vpop.f32.mrb[70].mxu1 }
 0x2fd   :  { %v1840_v29 = vpop.f32.mrb[71].mxu0  ;;  %v1904_v30 = vpop.f32.mrb[71].mxu1 }
 0x2fe   :  { %v1841_v32 = vadd.f32 %v1840_v29, %v1839_v28  ;;  %v1905_v35 = vadd.f32 %v1904_v30, %v1903_v13  ;;  %v1423_v40 = vadd.f32 %v1902_v27, %v1838_v25 }
 0x300   :  { %v1426_v41 = vadd.f32 %v1905_v35, %v1841_v32 }
 0x302   :  { %v1842_v42 = vpop.f32.mrb[72].mxu0  ;;  %v1906_v43 = vpop.f32.mrb[72].mxu1 }
 0x303   :  { %v1843_v44 = vpop.f32.mrb[73].mxu0  ;;  %v1907_v46 = vpop.f32.mrb[73].mxu1 }
 0x304   :  { %v1844_v47 = vadd.f32 %v1843_v44, %v1842_v42  ;;  %v1908_v49 = vadd.f32 %v1907_v46, %v1906_v43  ;;  %v1845_v50 = vpop.f32.mrb[74].mxu0  ;;  %v1909_v51 = vpop.f32.mrb[74].mxu1 }
 0x305   :  { %v1846_v26 = vpop.f32.mrb[75].mxu0  ;;  %v1910_v54 = vpop.f32.mrb[75].mxu1 }
 0x306   :  { %v1847_v55 = vadd.f32 %v1846_v26, %v1845_v50  ;;  %v1911_v56 = vadd.f32 %v1910_v54, %v1909_v51  ;;  %v1431_v58 = vadd.f32 %v1908_v49, %v1844_v47 }
 0x308   :  { %v2719_v60 = vadd.f32 %v1911_v56, %v1847_v55 }
 0x30a   :  { %v1848_v61 = vpop.f32.mrb[76].mxu0  ;;  %v1912_v62 = vpop.f32.mrb[76].mxu1 }
 0x30b   :  { %v1849_v63 = vpop.f32.mrb[77].mxu0  ;;  %v1913_v0 = vpop.f32.mrb[77].mxu1 }
 0x30c   :  { %v1850_v1 = vadd.f32 %v1849_v63, %v1848_v61  ;;  %v1914_v2 = vadd.f32 %v1913_v0, %v1912_v62  ;;  %v1851_v4 = vpop.f32.mrb[78].mxu0  ;;  %v1915_v37 = vpop.f32.mrb[78].mxu1 }
 0x30d   :  { %v1852_v7 = vpop.f32.mrb[79].mxu0  ;;  %v1916_v8 = vpop.f32.mrb[79].mxu1 }
 0x30e   :  { %v1853_v9 = vadd.f32 %v1852_v7, %v1851_v4  ;;  %v1917_v38 = vadd.f32 %v1916_v8, %v1915_v37  ;;  %v1439_v10 = vadd.f32 %v1914_v2, %v1850_v1 }
 0x310   :  { %v1442_v39 = vadd.f32 %v1917_v38, %v1853_v9 }
 0x312   :  { %v2032_v12 = vpop.f32.mrb[80].mxu0 }
 0x313   :  { %v1488_v14 = vadd.f32 %v2032_v12, %v2703_v33  ;;  %v1479_v15 = vpop.f32.mrb[81].mxu0 }
 0x314   :  { %v1480_v16 = vadd.f32 %v1479_v15, %v2699_v18  ;;  %v2033_v17 = vpop.f32.mrb[82].mxu0 }
 0x315   :  { %v1491_v21 = vadd.f32 %v2033_v17, %v2705_v34  ;;  %v1482_v22 = vpop.f32.mrb[83].mxu0 }
 0x316   :  { %v1483_v23 = vadd.f32 %v1482_v22, %v2701_v19 }
 0x317   :  { %v1543_v24 = vpack.c.bf16 %v1491_v21, %v1488_v14 }
 0x318   :  { %v1542_v25 = vpack.c.bf16 %v1483_v23, %v1480_v16 }
 0x31a   :  { %v2036_v27 = vpop.f32.mrb[84].mxu0  ;;  %2046 = vmatprep.subr.bf16.mxu1 %v1542_v25 }
 0x31b   :  { %v1504_v28 = vadd.f32 %v2036_v27, %v2711_v36  ;;  %v1495_v13 = vpop.f32.mrb[85].mxu0  ;;  %2047 = vmatpush3.bf16.msra.mxu1 %v1542_v25 }
 0x31c   :  { %v1496_v29 = vadd.f32 %v1495_v13, %v2707_v52  ;;  %v2037_v33 = vpop.f32.mrb[86].mxu0  ;;  %2048 = vmatprep.subr.bf16.mxu1 %v1543_v24 }
 0x31d   :  { %v1507_v18 = vadd.f32 %v2037_v33, %v2713_v6  ;;  %v1498_v30 = vpop.f32.mrb[87].mxu0 }
 0x31e   :  { %v1499_v34 = vadd.f32 %v1498_v30, %v2709_v53 }
 0x31f   :  { %v1545_v32 = vpack.c.bf16 %v1507_v18, %v1504_v28  ;;  %2049 = vmatpush3.bf16.msra.mxu1 %v1543_v24 }
 0x320   :  { %v1544_v19 = vpack.c.bf16 %v1499_v34, %v1496_v29 }
 0x322   :  { %v2040_v35 = vpop.f32.mrb[88].mxu0  ;;  %2050 = vmatprep.subr.bf16.mxu1 %v1544_v19 }
 0x323   :  { %v1520_v42 = vadd.f32 %v2040_v35, %v1423_v40  ;;  %v1511_v43 = vpop.f32.mrb[89].mxu0  ;;  %2051 = vmatpush3.bf16.msra.mxu1 %v1544_v19 }
 0x324   :  { %v1512_v36 = vadd.f32 %v1511_v43, %v2715_v31  ;;  %v2041_v44 = vpop.f32.mrb[90].mxu0  ;;  %2052 = vmatprep.subr.bf16.mxu1 %v1545_v32 }
 0x325   :  { %v1523_v52 = vadd.f32 %v2041_v44, %v1426_v41  ;;  %v1514_v46 = vpop.f32.mrb[91].mxu0 }
 0x326   :  { %v1515_v47 = vadd.f32 %v1514_v46, %v2717_v20  ;;  %v1757_v20 = vld [vmem:[%s2811_s5] ss:$0 sm:$0xff] }
 0x327   :  { %v1547_v6 = vpack.c.bf16 %v1523_v52, %v1520_v42  ;;  %2053 = vmatpush3.bf16.msra.mxu1 %v1545_v32 }
 0x328   :  { %v1546_v49 = vpack.c.bf16 %v1515_v47, %v1512_v36 }
 0x32a   :  { %v2044_v53 = vpop.f32.mrb[92].mxu0  ;;  %2054 = vmatprep.subr.bf16.mxu1 %v1546_v49 }
 0x32b   :  { %v1536_v50 = vadd.f32 %v2044_v53, %v1439_v10  ;;  %v1527_v51 = vpop.f32.mrb[93].mxu0  ;;  %2055 = vmatpush3.bf16.msra.mxu1 %v1546_v49 }
 0x32c   :  { %v1528_v26 = vadd.f32 %v1527_v51, %v1431_v58  ;;  %v2045_v40 = vpop.f32.mrb[94].mxu0  ;;  %2056 = vmatprep.subr.bf16.mxu1 %v1547_v6 }
 0x32d   :  { %v1539_v54 = vadd.f32 %v2045_v40, %v1442_v39  ;;  %v1530_v55 = vpop.f32.mrb[95].mxu0 }
 0x32e   :  { %v1531_v31 = vadd.f32 %v1530_v55, %v2719_v60 }
 0x32f   :  { %v1549_v56 = vpack.c.bf16 %v1539_v54, %v1536_v50  ;;  %2057 = vmatpush3.bf16.msra.mxu1 %v1547_v6 }
 0x330   :  { %v1548_v41 = vpack.c.bf16 %v1531_v31, %v1528_v26 }
 0x332   :  { %2058 = vmatprep.subr.bf16.mxu1 %v1548_v41 }
 0x333   :  { %2059 = vmatpush3.bf16.msra.mxu1 %v1548_v41 }
 0x334   :  { %2060 = vmatprep.subr.bf16.mxu1 %v1549_v56 }
 0x337   :  { %2061 = vmatpush3.bf16.msra.mxu1 %v1549_v56 }
 0x33a   :  { %2063 = vmatmul.mubr.bf16.vlgmr.msra.gmra.mrb[80].mxu1 %v2336_v45 }
 0x33b   :  { %2066 = vmatprep.mubr.bf16.mxu1 %v2344_v48 }
 0x342   :  { %2067 = vmatmul.mubr.bf16.gmra.mrb[84].mxu1 %v2360_v57 }
 0x343   :  { %2070 = vmatprep.mubr.bf16.mxu1 %v2365_v59 }
 0x34a   :  { %2071 = vmatmul.mubr.bf16.gmra.mrb[88].mxu1 %v2378_v3 }
 0x34b   :  { %2074 = vmatprep.mubr.bf16.mxu1 %v2383_v5 }
 0x352   :  { %2075 = vmatmul.mubr.bf16.gmra.mrb[92].mxu1 %v2396_v11 }
 0x40d   :  { %v2064_v58 = vpop.f32.mrb[80].mxu1 }
 0x40e   :  { %v1600_v60 = vadd.f32 %v2064_v58, %v1757_v20  ;;  %v1591_v45 = vpop.f32.mrb[81].mxu1 }
 0x40f   :  { %v1592_v61 = vadd.f32 %v1757_v20, %v1591_v45  ;;  %v2065_v48 = vpop.f32.mrb[82].mxu1 }
 0x410   :  { %1657 = vst.msk [vmem:[%s2812_s6 + $0x10] sm:$0xff] %vm1654_vm0, %v1600_v60  ;;  %v1603_v57 = vadd.f32 %v2065_v48, %v1757_v20  ;;  %v1594_v59 = vpop.f32.mrb[83].mxu1 }
 0x411   :  { %1655 = vst.msk [vmem:[%s2812_s6] sm:$0xff] %vm1654_vm0, %v1592_v61  ;;  %v1595_v3 = vadd.f32 %v1757_v20, %v1594_v59 }
 0x412   :  { %1658 = vst.msk [vmem:[%s2812_s6 + $0x18] sm:$0xff] %vm1654_vm0, %v1603_v57 }
 0x413   :  { %1656 = vst.msk [vmem:[%s2812_s6 + $0x8] sm:$0xff] %vm1654_vm0, %v1595_v3 }
 0x415   :  { %v2068_v5 = vpop.f32.mrb[84].mxu1 }
 0x416   :  { %v1616_v11 = vadd.f32 %v2068_v5, %v1757_v20  ;;  %v1607_v62 = vpop.f32.mrb[85].mxu1 }
 0x417   :  { %v1608_v63 = vadd.f32 %v1757_v20, %v1607_v62  ;;  %v2069_v0 = vpop.f32.mrb[86].mxu1 }
 0x418   :  { %1661 = vst.msk [vmem:[%s2812_s6 + $0x30] sm:$0xff] %vm1654_vm0, %v1616_v11  ;;  %v1619_v1 = vadd.f32 %v2069_v0, %v1757_v20  ;;  %v1610_v2 = vpop.f32.mrb[87].mxu1 }
 0x419   :  { %1659 = vst.msk [vmem:[%s2812_s6 + $0x20] sm:$0xff] %vm1654_vm0, %v1608_v63  ;;  %v1611_v4 = vadd.f32 %v1757_v20, %v1610_v2 }
 0x41a   :  { %1662 = vst.msk [vmem:[%s2812_s6 + $0x38] sm:$0xff] %vm1654_vm0, %v1619_v1 }
 0x41b   :  { %1660 = vst.msk [vmem:[%s2812_s6 + $0x28] sm:$0xff] %vm1654_vm0, %v1611_v4 }
 0x41d   :  { %v2072_v37 = vpop.f32.mrb[88].mxu1 }
 0x41e   :  { %v1632_v7 = vadd.f32 %v2072_v37, %v1757_v20  ;;  %v1623_v8 = vpop.f32.mrb[89].mxu1 }
 0x41f   :  { %v1624_v9 = vadd.f32 %v1757_v20, %v1623_v8  ;;  %v2073_v38 = vpop.f32.mrb[90].mxu1 }
 0x420   :  { %1665 = vst.msk [vmem:[%s2812_s6 + $0x50] sm:$0xff] %vm1654_vm0, %v1632_v7  ;;  %v1635_v10 = vadd.f32 %v2073_v38, %v1757_v20  ;;  %v1626_v39 = vpop.f32.mrb[91].mxu1 }
 0x421   :  { %1663 = vst.msk [vmem:[%s2812_s6 + $0x40] sm:$0xff] %vm1654_vm0, %v1624_v9  ;;  %v1627_v12 = vadd.f32 %v1757_v20, %v1626_v39 }
 0x422   :  { %1666 = vst.msk [vmem:[%s2812_s6 + $0x58] sm:$0xff] %vm1654_vm0, %v1635_v10 }
 0x423   :  { %1664 = vst.msk [vmem:[%s2812_s6 + $0x48] sm:$0xff] %vm1654_vm0, %v1627_v12 }
 0x425   :  { %v2076_v14 = vpop.f32.mrb[92].mxu1 }
 0x426   :  { %v1648_v15 = vadd.f32 %v2076_v14, %v1757_v20  ;;  %v1639_v16 = vpop.f32.mrb[93].mxu1 }
 0x427   :  { %v1640_v17 = vadd.f32 %v1757_v20, %v1639_v16  ;;  %v2077_v21 = vpop.f32.mrb[94].mxu1 }
 0x428   :  { %1669 = vst.msk [vmem:[%s2812_s6 + $0x70] sm:$0xff] %vm1654_vm0, %v1648_v15  ;;  %v1651_v22 = vadd.f32 %v2077_v21, %v1757_v20  ;;  %v1642_v23 = vpop.f32.mrb[95].mxu1 }
 0x429   :  { %1667 = vst.msk [vmem:[%s2812_s6 + $0x60] sm:$0xff] %vm1654_vm0, %v1640_v17  ;;  %v1643_v24 = vadd.f32 %v1757_v20, %v1642_v23 }
 0x42a   :  { %1670 = vst.msk [vmem:[%s2812_s6 + $0x78] sm:$0xff] %vm1654_vm0, %v1651_v22 }
 0x42b   :  { %1668 = vst.msk [vmem:[%s2812_s6 + $0x68] sm:$0xff] %vm1654_vm0, %v1643_v24 }
 0x42c   :  { %1675 = vsyncpa [#allocation3], 1 }
 0x42d   :  { %1676 = vsyncpa [#allocation5], 1 }

</bundles_post_ra>
